<compile_context>
chip_gen: v7x
topology: tpu7x:2x2x1
jax: 0.10.0
libtpu: 0.0.40
codegen_flags: <defaults>
</compile_context>

<pallas_src>
import functools
import math

import jax
import jax.numpy as jnp
from jax import lax
from jax.experimental import pallas as pl
from jax.experimental.pallas import tpu as pltpu

# Scoped-VMEM budget: safe on v7x (64 MiB physical / TC) and below physical on
# v5e/v6e (128 MiB); leaves headroom for double-buffered row tiles.
VMEM_LIMIT_BYTES = 32 * 1024 * 1024


# ----------------------------------------------------------------------------
# Fused kernels
# ----------------------------------------------------------------------------

def _mha_block_kernel(nheads, dqk, inv_scale,
                      x_ref, kv_ref,
                      wq_ref, bq_ref, wk_ref, bk_ref, wv_ref, bv_ref,
                      wo_ref, bo_ref, g_ref, beta_ref, o_ref):
    """LayerNorm(x + MHA(x, kv, kv)) for one batch element."""
    x = x_ref[0]                     # (S, D) f32 — query source and residual
    kv = kv_ref[0]                   # (T, D) f32 — key/value source
    xb = x.astype(jnp.bfloat16)
    kvb = kv.astype(jnp.bfloat16)

    # Stacked-head projections: one wide matmul per Q/K/V (lane-dense N = H*dqk).
    q = jnp.dot(xb, wq_ref[...], preferred_element_type=jnp.float32) + bq_ref[...]
    k = jnp.dot(kvb, wk_ref[...], preferred_element_type=jnp.float32) + bk_ref[...]
    v = jnp.dot(kvb, wv_ref[...], preferred_element_type=jnp.float32) + bv_ref[...]
    qb = q.astype(jnp.bfloat16)
    kb = k.astype(jnp.bfloat16)

    head_outs = []
    for h in range(nheads):                       # static unrolled head loop
        sl = slice(h * dqk, (h + 1) * dqk)
        # scores = q_h @ k_h^T expressed via dot_general (no materialized .T)
        s = lax.dot_general(qb[:, sl], kb[:, sl],
                            (((1,), (1,)), ((), ())),
                            preferred_element_type=jnp.float32) * inv_scale
        s = s - jnp.max(s, axis=-1, keepdims=True)
        e = jnp.exp(s)
        p = e * pl.reciprocal(jnp.sum(e, axis=-1, keepdims=True), approx=True)
        head_outs.append(
            jnp.dot(p.astype(jnp.bfloat16), v[:, sl].astype(jnp.bfloat16),
                    preferred_element_type=jnp.float32))
    cat = jnp.concatenate(head_outs, axis=-1)     # (S, H*dqk)

    attn = jnp.dot(cat.astype(jnp.bfloat16), wo_ref[...],
                   preferred_element_type=jnp.float32) + bo_ref[...]

    # Residual add + LayerNorm epilogue (f32, biased variance, eps=1e-5).
    y = x + attn
    mean = jnp.mean(y, axis=-1, keepdims=True)
    c = y - mean
    var = jnp.mean(c * c, axis=-1, keepdims=True)
    o_ref[0] = c * lax.rsqrt(var + 1e-5) * g_ref[...] + beta_ref[...]


def _ffn_block_kernel(x_ref, w1_ref, b1_ref, w2_ref, b2_ref,
                      g_ref, beta_ref, o_ref):
    """LayerNorm(x + Linear(ReLU(Linear(x)))) on a row tile."""
    x = x_ref[...]                                             # (TM, D) f32
    h = jnp.dot(x.astype(jnp.bfloat16), w1_ref[...],
                preferred_element_type=jnp.float32) + b1_ref[...]
    h = jnp.maximum(h, 0.0)
    f = jnp.dot(h.astype(jnp.bfloat16), w2_ref[...],
                preferred_element_type=jnp.float32) + b2_ref[...]
    y = x + f
    mean = jnp.mean(y, axis=-1, keepdims=True)
    c = y - mean
    var = jnp.mean(c * c, axis=-1, keepdims=True)
    o_ref[...] = c * lax.rsqrt(var + 1e-5) * g_ref[...] + beta_ref[...]


def _linear_softmax_kernel(x_ref, w_ref, b_ref, o_ref):
    """softmax(x @ W^T + b) on a row tile (exact divide for the final output)."""
    logits = jnp.dot(x_ref[...].astype(jnp.bfloat16), w_ref[...],
                     preferred_element_type=jnp.float32) + b_ref[...]
    m = jnp.max(logits, axis=-1, keepdims=True)
    e = jnp.exp(logits - m)
    o_ref[...] = e / jnp.sum(e, axis=-1, keepdims=True)


# ----------------------------------------------------------------------------
# Wrappers
# ----------------------------------------------------------------------------

def _row_tile(m, target=128):
    """Largest row tile (multiple of 8, <= target) that divides m."""
    if m % 8 != 0:
        return m
    tm = min(m, target)
    tm -= tm % 8
    while m % tm != 0:
        tm -= 8
    return tm


def mha_block_pallas(x, kv, mp, ln, num_heads):
    """Fused attention sub-layer: LayerNorm(x + MHA(x, kv, kv)).

    x: (B, S, D); kv: (Bk, T, D) with Bk in {1, B}.  Bk == 1 means the same
    K/V slab (e.g. the class vector) is shared across the batch and kept
    resident in VMEM (constant block index)."""
    B, S, D = x.shape
    Bk, T, _ = kv.shape
    HD = mp["q"]["wt"].shape[1]
    dqk = HD // num_heads
    inv_scale = 1.0 / math.sqrt(dqk)
    kv_map = (lambda b: (b, 0, 0)) if Bk == B else (lambda b: (0, 0, 0))
    const2 = lambda b: (0, 0)

    kernel = functools.partial(_mha_block_kernel, num_heads, dqk, inv_scale)
    return pl.pallas_call(
        kernel,
        out_shape=jax.ShapeDtypeStruct((B, S, D), jnp.float32),
        grid=(B,),
        in_specs=[
            pl.BlockSpec((1, S, D), lambda b: (b, 0, 0)),
            pl.BlockSpec((1, T, D), kv_map),
            pl.BlockSpec((D, HD), const2), pl.BlockSpec((1, HD), const2),
            pl.BlockSpec((D, HD), const2), pl.BlockSpec((1, HD), const2),
            pl.BlockSpec((D, HD), const2), pl.BlockSpec((1, HD), const2),
            pl.BlockSpec((HD, D), const2), pl.BlockSpec((1, D), const2),
            pl.BlockSpec((1, D), const2), pl.BlockSpec((1, D), const2),
        ],
        out_specs=pl.BlockSpec((1, S, D), lambda b: (b, 0, 0)),
        compiler_params=pltpu.CompilerParams(
            dimension_semantics=("parallel",),
            vmem_limit_bytes=VMEM_LIMIT_BYTES),
    )(x, kv,
      mp["q"]["wt"], mp["q"]["b"],
      mp["k"]["wt"], mp["k"]["b"],
      mp["v"]["wt"], mp["v"]["b"],
      mp["o"]["wt"], mp["o"]["b"],
      ln["g"], ln["b"])


def ffn_block_pallas(x, fp, ln):
    """Fused feed-forward sub-layer: LayerNorm(x + FFN(x)), row-tiled."""
    D = x.shape[-1]
    F = fp["l1"]["wt"].shape[1]
    x2 = x.reshape(-1, D)
    M = x2.shape[0]
    tm = _row_tile(M)
    const2 = lambda i: (0, 0)
    out = pl.pallas_call(
        _ffn_block_kernel,
        out_shape=jax.ShapeDtypeStruct((M, D), jnp.float32),
        grid=(M // tm,),
        in_specs=[
            pl.BlockSpec((tm, D), lambda i: (i, 0)),
            pl.BlockSpec((D, F), const2), pl.BlockSpec((1, F), const2),
            pl.BlockSpec((F, D), const2), pl.BlockSpec((1, D), const2),
            pl.BlockSpec((1, D), const2), pl.BlockSpec((1, D), const2),
        ],
        out_specs=pl.BlockSpec((tm, D), lambda i: (i, 0)),
        compiler_params=pltpu.CompilerParams(
            dimension_semantics=("parallel",),
            vmem_limit_bytes=VMEM_LIMIT_BYTES),
    )(x2, fp["l1"]["wt"], fp["l1"]["b"], fp["l2"]["wt"], fp["l2"]["b"],
      ln["g"], ln["b"])
    return out.reshape(x.shape)


def linear_softmax_pallas(x, lp):
    """Fused final projection + softmax over the last dim, row-tiled."""
    D = x.shape[-1]
    N = lp["wt"].shape[1]
    x2 = x.reshape(-1, D)
    M = x2.shape[0]
    tm = _row_tile(M)
    const2 = lambda i: (0, 0)
    out = pl.pallas_call(
        _linear_softmax_kernel,
        out_shape=jax.ShapeDtypeStruct((M, N), jnp.float32),
        grid=(M // tm,),
        in_specs=[
            pl.BlockSpec((tm, D), lambda i: (i, 0)),
            pl.BlockSpec((D, N), const2),
            pl.BlockSpec((1, N), const2),
        ],
        out_specs=pl.BlockSpec((tm, N), lambda i: (i, 0)),
        compiler_params=pltpu.CompilerParams(
            dimension_semantics=("parallel",),
            vmem_limit_bytes=VMEM_LIMIT_BYTES),
    )(x2, lp["wt"], lp["b"])
    return out.reshape(x.shape[:-1] + (N,))


# ----------------------------------------------------------------------------
# Positional encodings (plain-JAX glue, exact semantics of the reference code)
# ----------------------------------------------------------------------------

def encoder_position_encoding(seq_len, dim_model):
    pos = jnp.arange(seq_len, dtype=jnp.float32).reshape(1, -1, 1)
    dim = jnp.arange(dim_model, dtype=jnp.float32).reshape(1, 1, -1)
    # Faithful to the reference: 10000 ** (dim // dim_model) == 1 for dim < D.
    phase = pos / (10000.0 ** jnp.floor(dim / dim_model))
    even = (jnp.arange(dim_model).reshape(1, 1, -1) % 2) == 0
    return jnp.where(even, jnp.sin(phase), jnp.cos(phase))


def decoder_positional_encoding(seq_len, layer_count):
    pos = jnp.arange(seq_len, dtype=jnp.float32).reshape(-1, 1)
    i = jnp.arange(layer_count, dtype=jnp.float32).reshape(1, -1)
    phase = pos / (10000.0 ** (2.0 * i / layer_count))
    even = (jnp.arange(layer_count).reshape(1, -1) % 2) == 0
    return jnp.where(even, jnp.sin(phase), jnp.cos(phase))


# ----------------------------------------------------------------------------
# Parameter initialization (torch.nn.Linear-style uniform init, kernel-ready:
# weights stored pre-transposed as (in, out) bf16, biases as (1, out) f32)
# ----------------------------------------------------------------------------

def init_linear_t(key, in_dim, out_dim):
    kw, kb = jax.random.split(key)
    bound = 1.0 / math.sqrt(in_dim)
    w = jax.random.uniform(kw, (out_dim, in_dim), jnp.float32, -bound, bound)
    b = jax.random.uniform(kb, (out_dim,), jnp.float32, -bound, bound)
    return {"wt": w.T.astype(jnp.bfloat16), "b": b.reshape(1, out_dim)}


def init_mha(key, num_heads, dim_in, dim_qk):
    kq, kk, kv, ko = jax.random.split(key, 4)
    hd = num_heads * dim_qk
    return {
        "q": init_linear_t(kq, dim_in, hd),   # stacked per-head q projections
        "k": init_linear_t(kk, dim_in, hd),
        "v": init_linear_t(kv, dim_in, hd),
        "o": init_linear_t(ko, hd, dim_in),
    }


def init_ln(dim):
    return {"g": jnp.ones((1, dim), jnp.float32), "b": jnp.zeros((1, dim), jnp.float32)}


def init_ff(key, d_model, d_ff):
    k1, k2 = jax.random.split(key)
    return {"l1": init_linear_t(k1, d_model, d_ff),
            "l2": init_linear_t(k2, d_ff, d_model)}


def init_transformer_params(key, num_enc_layers, num_dec_layers, d_model, d_ff, num_heads):
    dim_qk = max(d_model // num_heads, 1)
    keys = jax.random.split(key, num_enc_layers + num_dec_layers + 1)
    enc_layers = []
    for l in range(num_enc_layers):
        k1, k2 = jax.random.split(keys[l])
        enc_layers.append({
            "mha": init_mha(k1, num_heads, d_model, dim_qk),
            "ln1": init_ln(d_model),
            "ff": init_ff(k2, d_model, d_ff),
            "ln2": init_ln(d_model),
        })
    dec_blocks = []
    for l in range(num_dec_layers):
        k1, k2, k3 = jax.random.split(keys[num_enc_layers + l], 3)
        dec_blocks.append({
            "self_mha": init_mha(k1, num_heads, d_model, dim_qk),
            "ln1": init_ln(d_model),
            "cross_mha": init_mha(k2, num_heads, d_model, dim_qk),
            "ln2": init_ln(d_model),
            "ff": init_ff(k3, d_model, d_ff),
            "ln3": init_ln(d_model),
        })
    final = init_linear_t(keys[-1], d_model, d_model)
    return {"encoder": enc_layers, "decoder": dec_blocks, "final": final}


# ----------------------------------------------------------------------------
# Model forward (glue around the fused Pallas kernels)
# ----------------------------------------------------------------------------

def encoder_forward(layers, src, num_heads):
    _, S, D = src.shape
    src = src + encoder_position_encoding(S, D)
    for lp in layers:
        src = mha_block_pallas(src, src, lp["mha"], lp["ln1"], num_heads)
        src = ffn_block_pallas(src, lp["ff"], lp["ln2"])
    return src


def decoder_forward(params, tgt, enc_out, class_vector, num_heads):
    del enc_out  # matches reference: Block ignores prevLayerOutput
    _, S, D = tgt.shape
    tgt = tgt + decoder_positional_encoding(S, D)[None]
    # shaped_classVector: (10, 1) expanded to (10, D); single shared (1,10,D)
    # slab (no per-batch broadcast in HBM — constant block index in the kernel).
    kv_class = jnp.broadcast_to(jnp.transpose(class_vector),
                                (class_vector.shape[1], D))[None]
    for bp in params["decoder"]:
        # masked self / rand-global attention stand-in (MHA + add + LN).
        tgt = mha_block_pallas(tgt, tgt, bp["self_mha"], bp["ln1"], num_heads)
        # cross attention against the class vector.
        tgt = mha_block_pallas(tgt, kv_class, bp["cross_mha"], bp["ln2"], num_heads)
        tgt = ffn_block_pallas(tgt, bp["ff"], bp["ln3"])
    return linear_softmax_pallas(tgt, params["final"])


def transformer_forward(params, src, tgt, class_vector, *, num_heads):
    enc_out = encoder_forward(params["encoder"], src, num_heads)
    return decoder_forward(params, tgt, enc_out, class_vector, num_heads)


# ----------------------------------------------------------------------------
# Main
# ----------------------------------------------------------------------------

if __name__ == "__main__":
    # small shapes consistent with the module's forward
    B, S, D_MODEL, D_FF, N_HEADS = 2, 8, 32, 64, 4
    N_ENC, N_DEC = 2, 2
    D_CLASS = 10

    root = jax.random.PRNGKey(0)
    k_params, k_src, k_tgt, k_cls = jax.random.split(root, 4)

    params = init_transformer_params(k_params, N_ENC, N_DEC, D_MODEL, D_FF, N_HEADS)
    src = jax.random.normal(k_src, (B, S, D_MODEL), jnp.float32)
    tgt = jax.random.normal(k_tgt, (B, S, D_MODEL), jnp.float32)
    class_vector = jax.random.uniform(k_cls, (1, D_CLASS), jnp.float32)

    fwd = jax.jit(functools.partial(transformer_forward, num_heads=N_HEADS))
    out = fwd(params, src, tgt, class_vector)
    out = jax.block_until_ready(out)

    assert out.shape == (B, S, D_MODEL)
    assert bool(jnp.all(jnp.isfinite(out)))
    # rows of the final softmax must sum to 1 (exact divide in the final kernel)
    assert bool(jnp.allclose(jnp.sum(out, axis=-1), 1.0, atol=1e-4))
    print("KERNEL_OK")
</pallas_src>

<mosaic_0001>
module attributes {stable_mosaic.version = 11 : i64} {
  func.func @_mha_block_kernel(%arg0: i32, %arg1: memref<1x8x32xf32, #tpu.memory_space<vmem>>, %arg2: memref<1x8x32xf32, #tpu.memory_space<vmem>>, %arg3: memref<32x32xbf16, #tpu.memory_space<vmem>>, %arg4: memref<1x32xf32, #tpu.memory_space<vmem>>, %arg5: memref<32x32xbf16, #tpu.memory_space<vmem>>, %arg6: memref<1x32xf32, #tpu.memory_space<vmem>>, %arg7: memref<32x32xbf16, #tpu.memory_space<vmem>>, %arg8: memref<1x32xf32, #tpu.memory_space<vmem>>, %arg9: memref<32x32xbf16, #tpu.memory_space<vmem>>, %arg10: memref<1x32xf32, #tpu.memory_space<vmem>>, %arg11: memref<1x32xf32, #tpu.memory_space<vmem>>, %arg12: memref<1x32xf32, #tpu.memory_space<vmem>>, %arg13: memref<1x8x32xf32, #tpu.memory_space<vmem>>) attributes {dimension_semantics = [#tpu.dimension_semantics<parallel>], iteration_bounds = array<i64: 2>, scalar_prefetch = 0 : i64, scratch_operands = 0 : i64, tpu.core_type = #tpu.core_type<tc>, window_params = [{transform_indices = @transform_0, window_bounds = array<i64: 1, 8, 32>}, {transform_indices = @transform_1, window_bounds = array<i64: 1, 8, 32>}, {pipeline_mode = #tpu.pipeline_mode<synchronous>, transform_indices = @transform_2, window_bounds = array<i64: 32, 32>}, {pipeline_mode = #tpu.pipeline_mode<synchronous>, transform_indices = @transform_3, window_bounds = array<i64: 1, 32>}, {pipeline_mode = #tpu.pipeline_mode<synchronous>, transform_indices = @transform_4, window_bounds = array<i64: 32, 32>}, {pipeline_mode = #tpu.pipeline_mode<synchronous>, transform_indices = @transform_5, window_bounds = array<i64: 1, 32>}, {pipeline_mode = #tpu.pipeline_mode<synchronous>, transform_indices = @transform_6, window_bounds = array<i64: 32, 32>}, {pipeline_mode = #tpu.pipeline_mode<synchronous>, transform_indices = @transform_7, window_bounds = array<i64: 1, 32>}, {pipeline_mode = #tpu.pipeline_mode<synchronous>, transform_indices = @transform_8, window_bounds = array<i64: 32, 32>}, {pipeline_mode = #tpu.pipeline_mode<synchronous>, transform_indices = @transform_9, window_bounds = array<i64: 1, 32>}, {pipeline_mode = #tpu.pipeline_mode<synchronous>, transform_indices = @transform_10, window_bounds = array<i64: 1, 32>}, {pipeline_mode = #tpu.pipeline_mode<synchronous>, transform_indices = @transform_11, window_bounds = array<i64: 1, 32>}, {transform_indices = @transform_12, window_bounds = array<i64: 1, 8, 32>}]} {
    %c0 = arith.constant 0 : index
    %c0_0 = arith.constant 0 : index
    %c0_1 = arith.constant 0 : index
    %0 = vector.load %arg1[%c0, %c0_0, %c0_1] : memref<1x8x32xf32, #tpu.memory_space<vmem>>, vector<1x8x32xf32>
    %1 = vector.shape_cast %0 : vector<1x8x32xf32> to vector<8x32xf32>
    %c0_2 = arith.constant 0 : index
    %c0_3 = arith.constant 0 : index
    %c0_4 = arith.constant 0 : index
    %2 = vector.load %arg2[%c0_2, %c0_3, %c0_4] : memref<1x8x32xf32, #tpu.memory_space<vmem>>, vector<1x8x32xf32>
    %3 = vector.shape_cast %2 : vector<1x8x32xf32> to vector<8x32xf32>
    %4 = arith.truncf %1 : vector<8x32xf32> to vector<8x32xbf16>
    %5 = arith.truncf %3 : vector<8x32xf32> to vector<8x32xbf16>
    %c0_5 = arith.constant 0 : index
    %c0_6 = arith.constant 0 : index
    %6 = vector.load %arg3[%c0_5, %c0_6] : memref<32x32xbf16, #tpu.memory_space<vmem>>, vector<32x32xbf16>
    %cst = arith.constant dense<0.000000e+00> : vector<8x32xf32>
    %7 = tpu.matmul %4, %6, %cst {dimension_numbers = #tpu.dot_dimension_numbers<[1], [0], [0], [1], [0, 0, 1, 1], [], []>} : vector<8x32xbf16>, vector<32x32xbf16>, vector<8x32xf32> -> vector<8x32xf32>
    %c0_7 = arith.constant 0 : index
    %c0_8 = arith.constant 0 : index
    %8 = vector.load %arg4[%c0_7, %c0_8] : memref<1x32xf32, #tpu.memory_space<vmem>>, vector<1x32xf32>
    %9 = vector.broadcast %8 : vector<1x32xf32> to vector<8x32xf32>
    %10 = arith.addf %7, %9 : vector<8x32xf32>
    %c0_9 = arith.constant 0 : index
    %c0_10 = arith.constant 0 : index
    %11 = vector.load %arg5[%c0_9, %c0_10] : memref<32x32xbf16, #tpu.memory_space<vmem>>, vector<32x32xbf16>
    %cst_11 = arith.constant dense<0.000000e+00> : vector<8x32xf32>
    %12 = tpu.matmul %5, %11, %cst_11 {dimension_numbers = #tpu.dot_dimension_numbers<[1], [0], [0], [1], [0, 0, 1, 1], [], []>} : vector<8x32xbf16>, vector<32x32xbf16>, vector<8x32xf32> -> vector<8x32xf32>
    %c0_12 = arith.constant 0 : index
    %c0_13 = arith.constant 0 : index
    %13 = vector.load %arg6[%c0_12, %c0_13] : memref<1x32xf32, #tpu.memory_space<vmem>>, vector<1x32xf32>
    %14 = vector.broadcast %13 : vector<1x32xf32> to vector<8x32xf32>
    %15 = arith.addf %12, %14 : vector<8x32xf32>
    %c0_14 = arith.constant 0 : index
    %c0_15 = arith.constant 0 : index
    %16 = vector.load %arg7[%c0_14, %c0_15] : memref<32x32xbf16, #tpu.memory_space<vmem>>, vector<32x32xbf16>
    %cst_16 = arith.constant dense<0.000000e+00> : vector<8x32xf32>
    %17 = tpu.matmul %5, %16, %cst_16 {dimension_numbers = #tpu.dot_dimension_numbers<[1], [0], [0], [1], [0, 0, 1, 1], [], []>} : vector<8x32xbf16>, vector<32x32xbf16>, vector<8x32xf32> -> vector<8x32xf32>
    %c0_17 = arith.constant 0 : index
    %c0_18 = arith.constant 0 : index
    %18 = vector.load %arg8[%c0_17, %c0_18] : memref<1x32xf32, #tpu.memory_space<vmem>>, vector<1x32xf32>
    %19 = vector.broadcast %18 : vector<1x32xf32> to vector<8x32xf32>
    %20 = arith.addf %17, %19 : vector<8x32xf32>
    %21 = arith.truncf %10 : vector<8x32xf32> to vector<8x32xbf16>
    %22 = arith.truncf %15 : vector<8x32xf32> to vector<8x32xbf16>
    %23 = vector.extract_strided_slice %21 {offsets = [0, 0], sizes = [8, 8], strides = [1, 1]} : vector<8x32xbf16> to vector<8x8xbf16>
    %24 = vector.extract_strided_slice %22 {offsets = [0, 0], sizes = [8, 8], strides = [1, 1]} : vector<8x32xbf16> to vector<8x8xbf16>
    %cst_19 = arith.constant dense<0.000000e+00> : vector<8x8xf32>
    %25 = tpu.matmul %23, %24, %cst_19 {dimension_numbers = #tpu.dot_dimension_numbers<[1], [1], [0], [0], [0, 0, 1, 0], [], []>} : vector<8x8xbf16>, vector<8x8xbf16>, vector<8x8xf32> -> vector<8x8xf32>
    %cst_20 = arith.constant 0.353553385 : f32
    %26 = vector.broadcast %cst_20 : f32 to vector<8x8xf32>
    %27 = arith.mulf %25, %26 : vector<8x8xf32>
    %cst_21 = arith.constant dense<0xFF800000> : vector<8xf32>
    %28 = vector.multi_reduction <maximumf>, %27, %cst_21 [1] : vector<8x8xf32> to vector<8xf32>
    %29 = vector.shape_cast %28 : vector<8xf32> to vector<8x1xf32>
    %30 = vector.broadcast %29 : vector<8x1xf32> to vector<8x8xf32>
    %31 = arith.subf %27, %30 : vector<8x8xf32>
    %32 = math.exp %31 : vector<8x8xf32>
    %cst_22 = arith.constant dense<0.000000e+00> : vector<8xf32>
    %33 = vector.multi_reduction <add>, %32, %cst_22 [1] : vector<8x8xf32> to vector<8xf32>
    %34 = vector.shape_cast %33 : vector<8xf32> to vector<8x1xf32>
    %35 = tpu.reciprocal %34 {approx = true} : vector<8x1xf32> -> vector<8x1xf32>
    %36 = vector.broadcast %35 : vector<8x1xf32> to vector<8x8xf32>
    %37 = arith.mulf %32, %36 : vector<8x8xf32>
    %38 = arith.truncf %37 : vector<8x8xf32> to vector<8x8xbf16>
    %39 = vector.extract_strided_slice %20 {offsets = [0, 0], sizes = [8, 8], strides = [1, 1]} : vector<8x32xf32> to vector<8x8xf32>
    %40 = arith.truncf %39 : vector<8x8xf32> to vector<8x8xbf16>
    %cst_23 = arith.constant dense<0.000000e+00> : vector<8x8xf32>
    %41 = tpu.matmul %38, %40, %cst_23 {dimension_numbers = #tpu.dot_dimension_numbers<[1], [0], [0], [1], [0, 0, 1, 1], [], []>} : vector<8x8xbf16>, vector<8x8xbf16>, vector<8x8xf32> -> vector<8x8xf32>
    %42 = vector.extract_strided_slice %21 {offsets = [0, 8], sizes = [8, 8], strides = [1, 1]} : vector<8x32xbf16> to vector<8x8xbf16>
    %43 = vector.extract_strided_slice %22 {offsets = [0, 8], sizes = [8, 8], strides = [1, 1]} : vector<8x32xbf16> to vector<8x8xbf16>
    %cst_24 = arith.constant dense<0.000000e+00> : vector<8x8xf32>
    %44 = tpu.matmul %42, %43, %cst_24 {dimension_numbers = #tpu.dot_dimension_numbers<[1], [1], [0], [0], [0, 0, 1, 0], [], []>} : vector<8x8xbf16>, vector<8x8xbf16>, vector<8x8xf32> -> vector<8x8xf32>
    %cst_25 = arith.constant 0.353553385 : f32
    %45 = vector.broadcast %cst_25 : f32 to vector<8x8xf32>
    %46 = arith.mulf %44, %45 : vector<8x8xf32>
    %cst_26 = arith.constant dense<0xFF800000> : vector<8xf32>
    %47 = vector.multi_reduction <maximumf>, %46, %cst_26 [1] : vector<8x8xf32> to vector<8xf32>
    %48 = vector.shape_cast %47 : vector<8xf32> to vector<8x1xf32>
    %49 = vector.broadcast %48 : vector<8x1xf32> to vector<8x8xf32>
    %50 = arith.subf %46, %49 : vector<8x8xf32>
    %51 = math.exp %50 : vector<8x8xf32>
    %cst_27 = arith.constant dense<0.000000e+00> : vector<8xf32>
    %52 = vector.multi_reduction <add>, %51, %cst_27 [1] : vector<8x8xf32> to vector<8xf32>
    %53 = vector.shape_cast %52 : vector<8xf32> to vector<8x1xf32>
    %54 = tpu.reciprocal %53 {approx = true} : vector<8x1xf32> -> vector<8x1xf32>
    %55 = vector.broadcast %54 : vector<8x1xf32> to vector<8x8xf32>
    %56 = arith.mulf %51, %55 : vector<8x8xf32>
    %57 = arith.truncf %56 : vector<8x8xf32> to vector<8x8xbf16>
    %58 = vector.extract_strided_slice %20 {offsets = [0, 8], sizes = [8, 8], strides = [1, 1]} : vector<8x32xf32> to vector<8x8xf32>
    %59 = arith.truncf %58 : vector<8x8xf32> to vector<8x8xbf16>
    %cst_28 = arith.constant dense<0.000000e+00> : vector<8x8xf32>
    %60 = tpu.matmul %57, %59, %cst_28 {dimension_numbers = #tpu.dot_dimension_numbers<[1], [0], [0], [1], [0, 0, 1, 1], [], []>} : vector<8x8xbf16>, vector<8x8xbf16>, vector<8x8xf32> -> vector<8x8xf32>
    %61 = vector.extract_strided_slice %21 {offsets = [0, 16], sizes = [8, 8], strides = [1, 1]} : vector<8x32xbf16> to vector<8x8xbf16>
    %62 = vector.extract_strided_slice %22 {offsets = [0, 16], sizes = [8, 8], strides = [1, 1]} : vector<8x32xbf16> to vector<8x8xbf16>
    %cst_29 = arith.constant dense<0.000000e+00> : vector<8x8xf32>
    %63 = tpu.matmul %61, %62, %cst_29 {dimension_numbers = #tpu.dot_dimension_numbers<[1], [1], [0], [0], [0, 0, 1, 0], [], []>} : vector<8x8xbf16>, vector<8x8xbf16>, vector<8x8xf32> -> vector<8x8xf32>
    %cst_30 = arith.constant 0.353553385 : f32
    %64 = vector.broadcast %cst_30 : f32 to vector<8x8xf32>
    %65 = arith.mulf %63, %64 : vector<8x8xf32>
    %cst_31 = arith.constant dense<0xFF800000> : vector<8xf32>
    %66 = vector.multi_reduction <maximumf>, %65, %cst_31 [1] : vector<8x8xf32> to vector<8xf32>
    %67 = vector.shape_cast %66 : vector<8xf32> to vector<8x1xf32>
    %68 = vector.broadcast %67 : vector<8x1xf32> to vector<8x8xf32>
    %69 = arith.subf %65, %68 : vector<8x8xf32>
    %70 = math.exp %69 : vector<8x8xf32>
    %cst_32 = arith.constant dense<0.000000e+00> : vector<8xf32>
    %71 = vector.multi_reduction <add>, %70, %cst_32 [1] : vector<8x8xf32> to vector<8xf32>
    %72 = vector.shape_cast %71 : vector<8xf32> to vector<8x1xf32>
    %73 = tpu.reciprocal %72 {approx = true} : vector<8x1xf32> -> vector<8x1xf32>
    %74 = vector.broadcast %73 : vector<8x1xf32> to vector<8x8xf32>
    %75 = arith.mulf %70, %74 : vector<8x8xf32>
    %76 = arith.truncf %75 : vector<8x8xf32> to vector<8x8xbf16>
    %77 = vector.extract_strided_slice %20 {offsets = [0, 16], sizes = [8, 8], strides = [1, 1]} : vector<8x32xf32> to vector<8x8xf32>
    %78 = arith.truncf %77 : vector<8x8xf32> to vector<8x8xbf16>
    %cst_33 = arith.constant dense<0.000000e+00> : vector<8x8xf32>
    %79 = tpu.matmul %76, %78, %cst_33 {dimension_numbers = #tpu.dot_dimension_numbers<[1], [0], [0], [1], [0, 0, 1, 1], [], []>} : vector<8x8xbf16>, vector<8x8xbf16>, vector<8x8xf32> -> vector<8x8xf32>
    %80 = vector.extract_strided_slice %21 {offsets = [0, 24], sizes = [8, 8], strides = [1, 1]} : vector<8x32xbf16> to vector<8x8xbf16>
    %81 = vector.extract_strided_slice %22 {offsets = [0, 24], sizes = [8, 8], strides = [1, 1]} : vector<8x32xbf16> to vector<8x8xbf16>
    %cst_34 = arith.constant dense<0.000000e+00> : vector<8x8xf32>
    %82 = tpu.matmul %80, %81, %cst_34 {dimension_numbers = #tpu.dot_dimension_numbers<[1], [1], [0], [0], [0, 0, 1, 0], [], []>} : vector<8x8xbf16>, vector<8x8xbf16>, vector<8x8xf32> -> vector<8x8xf32>
    %cst_35 = arith.constant 0.353553385 : f32
    %83 = vector.broadcast %cst_35 : f32 to vector<8x8xf32>
    %84 = arith.mulf %82, %83 : vector<8x8xf32>
    %cst_36 = arith.constant dense<0xFF800000> : vector<8xf32>
    %85 = vector.multi_reduction <maximumf>, %84, %cst_36 [1] : vector<8x8xf32> to vector<8xf32>
    %86 = vector.shape_cast %85 : vector<8xf32> to vector<8x1xf32>
    %87 = vector.broadcast %86 : vector<8x1xf32> to vector<8x8xf32>
    %88 = arith.subf %84, %87 : vector<8x8xf32>
    %89 = math.exp %88 : vector<8x8xf32>
    %cst_37 = arith.constant dense<0.000000e+00> : vector<8xf32>
    %90 = vector.multi_reduction <add>, %89, %cst_37 [1] : vector<8x8xf32> to vector<8xf32>
    %91 = vector.shape_cast %90 : vector<8xf32> to vector<8x1xf32>
    %92 = tpu.reciprocal %91 {approx = true} : vector<8x1xf32> -> vector<8x1xf32>
    %93 = vector.broadcast %92 : vector<8x1xf32> to vector<8x8xf32>
    %94 = arith.mulf %89, %93 : vector<8x8xf32>
    %95 = arith.truncf %94 : vector<8x8xf32> to vector<8x8xbf16>
    %96 = vector.extract_strided_slice %20 {offsets = [0, 24], sizes = [8, 8], strides = [1, 1]} : vector<8x32xf32> to vector<8x8xf32>
    %97 = arith.truncf %96 : vector<8x8xf32> to vector<8x8xbf16>
    %cst_38 = arith.constant dense<0.000000e+00> : vector<8x8xf32>
    %98 = tpu.matmul %95, %97, %cst_38 {dimension_numbers = #tpu.dot_dimension_numbers<[1], [0], [0], [1], [0, 0, 1, 1], [], []>} : vector<8x8xbf16>, vector<8x8xbf16>, vector<8x8xf32> -> vector<8x8xf32>
    %99 = tpu.concatenate %41, %60, %79, %98 in 1 : vector<8x8xf32>, vector<8x8xf32>, vector<8x8xf32>, vector<8x8xf32> -> vector<8x32xf32>
    %100 = arith.truncf %99 : vector<8x32xf32> to vector<8x32xbf16>
    %c0_39 = arith.constant 0 : index
    %c0_40 = arith.constant 0 : index
    %101 = vector.load %arg9[%c0_39, %c0_40] : memref<32x32xbf16, #tpu.memory_space<vmem>>, vector<32x32xbf16>
    %cst_41 = arith.constant dense<0.000000e+00> : vector<8x32xf32>
    %102 = tpu.matmul %100, %101, %cst_41 {dimension_numbers = #tpu.dot_dimension_numbers<[1], [0], [0], [1], [0, 0, 1, 1], [], []>} : vector<8x32xbf16>, vector<32x32xbf16>, vector<8x32xf32> -> vector<8x32xf32>
    %c0_42 = arith.constant 0 : index
    %c0_43 = arith.constant 0 : index
    %103 = vector.load %arg10[%c0_42, %c0_43] : memref<1x32xf32, #tpu.memory_space<vmem>>, vector<1x32xf32>
    %104 = vector.broadcast %103 : vector<1x32xf32> to vector<8x32xf32>
    %105 = arith.addf %102, %104 : vector<8x32xf32>
    %106 = arith.addf %1, %105 : vector<8x32xf32>
    %cst_44 = arith.constant dense<0.000000e+00> : vector<8xf32>
    %107 = vector.multi_reduction <add>, %106, %cst_44 [1] : vector<8x32xf32> to vector<8xf32>
    %108 = vector.shape_cast %107 : vector<8xf32> to vector<8x1xf32>
    %cst_45 = arith.constant 3.200000e+01 : f32
    %109 = vector.broadcast %cst_45 : f32 to vector<8x1xf32>
    %110 = arith.divf %108, %109 : vector<8x1xf32>
    %111 = vector.broadcast %110 : vector<8x1xf32> to vector<8x32xf32>
    %112 = arith.subf %106, %111 : vector<8x32xf32>
    %113 = arith.mulf %112, %112 : vector<8x32xf32>
    %cst_46 = arith.constant dense<0.000000e+00> : vector<8xf32>
    %114 = vector.multi_reduction <add>, %113, %cst_46 [1] : vector<8x32xf32> to vector<8xf32>
    %115 = vector.shape_cast %114 : vector<8xf32> to vector<8x1xf32>
    %cst_47 = arith.constant 3.200000e+01 : f32
    %116 = vector.broadcast %cst_47 : f32 to vector<8x1xf32>
    %117 = arith.divf %115, %116 : vector<8x1xf32>
    %cst_48 = arith.constant 9.99999974E-6 : f32
    %118 = vector.broadcast %cst_48 : f32 to vector<8x1xf32>
    %119 = arith.addf %117, %118 : vector<8x1xf32>
    %120 = math.rsqrt %119 : vector<8x1xf32>
    %121 = vector.broadcast %120 : vector<8x1xf32> to vector<8x32xf32>
    %122 = arith.mulf %112, %121 : vector<8x32xf32>
    %c0_49 = arith.constant 0 : index
    %c0_50 = arith.constant 0 : index
    %123 = vector.load %arg11[%c0_49, %c0_50] : memref<1x32xf32, #tpu.memory_space<vmem>>, vector<1x32xf32>
    %124 = vector.broadcast %123 : vector<1x32xf32> to vector<8x32xf32>
    %125 = arith.mulf %122, %124 : vector<8x32xf32>
    %c0_51 = arith.constant 0 : index
    %c0_52 = arith.constant 0 : index
    %126 = vector.load %arg12[%c0_51, %c0_52] : memref<1x32xf32, #tpu.memory_space<vmem>>, vector<1x32xf32>
    %127 = vector.broadcast %126 : vector<1x32xf32> to vector<8x32xf32>
    %128 = arith.addf %125, %127 : vector<8x32xf32>
    %c0_53 = arith.constant 0 : index
    %c0_54 = arith.constant 0 : index
    %c0_55 = arith.constant 0 : index
    %129 = vector.load %arg13[%c0_53, %c0_54, %c0_55] : memref<1x8x32xf32, #tpu.memory_space<vmem>>, vector<1x8x32xf32>
    %130 = vector.shape_cast %129 : vector<1x8x32xf32> to vector<8x32xf32>
    %131 = vector.shape_cast %128 : vector<8x32xf32> to vector<1x8x32xf32>
    tpu.vector_store %arg13[%c0_53, %c0_54, %c0_55], %131 {strides = array<i32>} : memref<1x8x32xf32, #tpu.memory_space<vmem>>, vector<1x8x32xf32>,
    return
  }
  func.func @transform_0(%arg0: i32) -> (i32, i32, i32) {
    %c0_i32 = arith.constant 0 : i32
    %c0_i32_0 = arith.constant 0 : i32
    %c0_i32_1 = arith.constant 0 : i32
    return %arg0, %c0_i32, %c0_i32_0 : i32, i32, i32
  }
  func.func @transform_1(%arg0: i32) -> (i32, i32, i32) {
    %c0_i32 = arith.constant 0 : i32
    %c0_i32_0 = arith.constant 0 : i32
    %c0_i32_1 = arith.constant 0 : i32
    return %arg0, %c0_i32, %c0_i32_0 : i32, i32, i32
  }
  func.func @transform_2(%arg0: i32) -> (i32, i32) {
    %c0_i32 = arith.constant 0 : i32
    %c0_i32_0 = arith.constant 0 : i32
    %c0_i32_1 = arith.constant 0 : i32
    return %c0_i32, %c0_i32_0 : i32, i32
  }
  func.func @transform_3(%arg0: i32) -> (i32, i32) {
    %c0_i32 = arith.constant 0 : i32
    %c0_i32_0 = arith.constant 0 : i32
    %c0_i32_1 = arith.constant 0 : i32
    return %c0_i32, %c0_i32_0 : i32, i32
  }
  func.func @transform_4(%arg0: i32) -> (i32, i32) {
    %c0_i32 = arith.constant 0 : i32
    %c0_i32_0 = arith.constant 0 : i32
    %c0_i32_1 = arith.constant 0 : i32
    return %c0_i32, %c0_i32_0 : i32, i32
  }
  func.func @transform_5(%arg0: i32) -> (i32, i32) {
    %c0_i32 = arith.constant 0 : i32
    %c0_i32_0 = arith.constant 0 : i32
    %c0_i32_1 = arith.constant 0 : i32
    return %c0_i32, %c0_i32_0 : i32, i32
  }
  func.func @transform_6(%arg0: i32) -> (i32, i32) {
    %c0_i32 = arith.constant 0 : i32
    %c0_i32_0 = arith.constant 0 : i32
    %c0_i32_1 = arith.constant 0 : i32
    return %c0_i32, %c0_i32_0 : i32, i32
  }
  func.func @transform_7(%arg0: i32) -> (i32, i32) {
    %c0_i32 = arith.constant 0 : i32
    %c0_i32_0 = arith.constant 0 : i32
    %c0_i32_1 = arith.constant 0 : i32
    return %c0_i32, %c0_i32_0 : i32, i32
  }
  func.func @transform_8(%arg0: i32) -> (i32, i32) {
    %c0_i32 = arith.constant 0 : i32
    %c0_i32_0 = arith.constant 0 : i32
    %c0_i32_1 = arith.constant 0 : i32
    return %c0_i32, %c0_i32_0 : i32, i32
  }
  func.func @transform_9(%arg0: i32) -> (i32, i32) {
    %c0_i32 = arith.constant 0 : i32
    %c0_i32_0 = arith.constant 0 : i32
    %c0_i32_1 = arith.constant 0 : i32
    return %c0_i32, %c0_i32_0 : i32, i32
  }
  func.func @transform_10(%arg0: i32) -> (i32, i32) {
    %c0_i32 = arith.constant 0 : i32
    %c0_i32_0 = arith.constant 0 : i32
    %c0_i32_1 = arith.constant 0 : i32
    return %c0_i32, %c0_i32_0 : i32, i32
  }
  func.func @transform_11(%arg0: i32) -> (i32, i32) {
    %c0_i32 = arith.constant 0 : i32
    %c0_i32_0 = arith.constant 0 : i32
    %c0_i32_1 = arith.constant 0 : i32
    return %c0_i32, %c0_i32_0 : i32, i32
  }
  func.func @transform_12(%arg0: i32) -> (i32, i32, i32) {
    %c0_i32 = arith.constant 0 : i32
    %c0_i32_0 = arith.constant 0 : i32
    %c0_i32_1 = arith.constant 0 : i32
    return %arg0, %c0_i32, %c0_i32_0 : i32, i32, i32
  }
}

module attributes {stable_mosaic.version = 11 : i64} {
  func.func @_mha_block_kernel(%arg0: i32, %arg1: memref<1x8x32xf32, #tpu.memory_space<vmem>>, %arg2: memref<1x10x32xf32, #tpu.memory_space<vmem>>, %arg3: memref<32x32xbf16, #tpu.memory_space<vmem>>, %arg4: memref<1x32xf32, #tpu.memory_space<vmem>>, %arg5: memref<32x32xbf16, #tpu.memory_space<vmem>>, %arg6: memref<1x32xf32, #tpu.memory_space<vmem>>, %arg7: memref<32x32xbf16, #tpu.memory_space<vmem>>, %arg8: memref<1x32xf32, #tpu.memory_space<vmem>>, %arg9: memref<32x32xbf16, #tpu.memory_space<vmem>>, %arg10: memref<1x32xf32, #tpu.memory_space<vmem>>, %arg11: memref<1x32xf32, #tpu.memory_space<vmem>>, %arg12: memref<1x32xf32, #tpu.memory_space<vmem>>, %arg13: memref<1x8x32xf32, #tpu.memory_space<vmem>>) attributes {dimension_semantics = [#tpu.dimension_semantics<parallel>], iteration_bounds = array<i64: 2>, scalar_prefetch = 0 : i64, scratch_operands = 0 : i64, tpu.core_type = #tpu.core_type<tc>, window_params = [{transform_indices = @transform_0, window_bounds = array<i64: 1, 8, 32>}, {pipeline_mode = #tpu.pipeline_mode<synchronous>, transform_indices = @transform_1, window_bounds = array<i64: 1, 10, 32>}, {pipeline_mode = #tpu.pipeline_mode<synchronous>, transform_indices = @transform_2, window_bounds = array<i64: 32, 32>}, {pipeline_mode = #tpu.pipeline_mode<synchronous>, transform_indices = @transform_3, window_bounds = array<i64: 1, 32>}, {pipeline_mode = #tpu.pipeline_mode<synchronous>, transform_indices = @transform_4, window_bounds = array<i64: 32, 32>}, {pipeline_mode = #tpu.pipeline_mode<synchronous>, transform_indices = @transform_5, window_bounds = array<i64: 1, 32>}, {pipeline_mode = #tpu.pipeline_mode<synchronous>, transform_indices = @transform_6, window_bounds = array<i64: 32, 32>}, {pipeline_mode = #tpu.pipeline_mode<synchronous>, transform_indices = @transform_7, window_bounds = array<i64: 1, 32>}, {pipeline_mode = #tpu.pipeline_mode<synchronous>, transform_indices = @transform_8, window_bounds = array<i64: 32, 32>}, {pipeline_mode = #tpu.pipeline_mode<synchronous>, transform_indices = @transform_9, window_bounds = array<i64: 1, 32>}, {pipeline_mode = #tpu.pipeline_mode<synchronous>, transform_indices = @transform_10, window_bounds = array<i64: 1, 32>}, {pipeline_mode = #tpu.pipeline_mode<synchronous>, transform_indices = @transform_11, window_bounds = array<i64: 1, 32>}, {transform_indices = @transform_12, window_bounds = array<i64: 1, 8, 32>}]} {
    %c0 = arith.constant 0 : index
    %c0_0 = arith.constant 0 : index
    %c0_1 = arith.constant 0 : index
    %0 = vector.load %arg1[%c0, %c0_0, %c0_1] : memref<1x8x32xf32, #tpu.memory_space<vmem>>, vector<1x8x32xf32>
    %1 = vector.shape_cast %0 : vector<1x8x32xf32> to vector<8x32xf32>
    %c0_2 = arith.constant 0 : index
    %c0_3 = arith.constant 0 : index
    %c0_4 = arith.constant 0 : index
    %2 = vector.load %arg2[%c0_2, %c0_3, %c0_4] : memref<1x10x32xf32, #tpu.memory_space<vmem>>, vector<1x10x32xf32>
    %3 = vector.shape_cast %2 : vector<1x10x32xf32> to vector<10x32xf32>
    %4 = arith.truncf %1 : vector<8x32xf32> to vector<8x32xbf16>
    %5 = arith.truncf %3 : vector<10x32xf32> to vector<10x32xbf16>
    %c0_5 = arith.constant 0 : index
    %c0_6 = arith.constant 0 : index
    %6 = vector.load %arg3[%c0_5, %c0_6] : memref<32x32xbf16, #tpu.memory_space<vmem>>, vector<32x32xbf16>
    %cst = arith.constant dense<0.000000e+00> : vector<8x32xf32>
    %7 = tpu.matmul %4, %6, %cst {dimension_numbers = #tpu.dot_dimension_numbers<[1], [0], [0], [1], [0, 0, 1, 1], [], []>} : vector<8x32xbf16>, vector<32x32xbf16>, vector<8x32xf32> -> vector<8x32xf32>
    %c0_7 = arith.constant 0 : index
    %c0_8 = arith.constant 0 : index
    %8 = vector.load %arg4[%c0_7, %c0_8] : memref<1x32xf32, #tpu.memory_space<vmem>>, vector<1x32xf32>
    %9 = vector.broadcast %8 : vector<1x32xf32> to vector<8x32xf32>
    %10 = arith.addf %7, %9 : vector<8x32xf32>
    %c0_9 = arith.constant 0 : index
    %c0_10 = arith.constant 0 : index
    %11 = vector.load %arg5[%c0_9, %c0_10] : memref<32x32xbf16, #tpu.memory_space<vmem>>, vector<32x32xbf16>
    %cst_11 = arith.constant dense<0.000000e+00> : vector<10x32xf32>
    %12 = tpu.matmul %5, %11, %cst_11 {dimension_numbers = #tpu.dot_dimension_numbers<[1], [0], [0], [1], [0, 0, 1, 1], [], []>} : vector<10x32xbf16>, vector<32x32xbf16>, vector<10x32xf32> -> vector<10x32xf32>
    %c0_12 = arith.constant 0 : index
    %c0_13 = arith.constant 0 : index
    %13 = vector.load %arg6[%c0_12, %c0_13] : memref<1x32xf32, #tpu.memory_space<vmem>>, vector<1x32xf32>
    %14 = vector.broadcast %13 : vector<1x32xf32> to vector<10x32xf32>
    %15 = arith.addf %12, %14 : vector<10x32xf32>
    %c0_14 = arith.constant 0 : index
    %c0_15 = arith.constant 0 : index
    %16 = vector.load %arg7[%c0_14, %c0_15] : memref<32x32xbf16, #tpu.memory_space<vmem>>, vector<32x32xbf16>
    %cst_16 = arith.constant dense<0.000000e+00> : vector<10x32xf32>
    %17 = tpu.matmul %5, %16, %cst_16 {dimension_numbers = #tpu.dot_dimension_numbers<[1], [0], [0], [1], [0, 0, 1, 1], [], []>} : vector<10x32xbf16>, vector<32x32xbf16>, vector<10x32xf32> -> vector<10x32xf32>
    %c0_17 = arith.constant 0 : index
    %c0_18 = arith.constant 0 : index
    %18 = vector.load %arg8[%c0_17, %c0_18] : memref<1x32xf32, #tpu.memory_space<vmem>>, vector<1x32xf32>
    %19 = vector.broadcast %18 : vector<1x32xf32> to vector<10x32xf32>
    %20 = arith.addf %17, %19 : vector<10x32xf32>
    %21 = arith.truncf %10 : vector<8x32xf32> to vector<8x32xbf16>
    %22 = arith.truncf %15 : vector<10x32xf32> to vector<10x32xbf16>
    %23 = vector.extract_strided_slice %21 {offsets = [0, 0], sizes = [8, 8], strides = [1, 1]} : vector<8x32xbf16> to vector<8x8xbf16>
    %24 = vector.extract_strided_slice %22 {offsets = [0, 0], sizes = [10, 8], strides = [1, 1]} : vector<10x32xbf16> to vector<10x8xbf16>
    %cst_19 = arith.constant dense<0.000000e+00> : vector<8x10xf32>
    %25 = tpu.matmul %23, %24, %cst_19 {dimension_numbers = #tpu.dot_dimension_numbers<[1], [1], [0], [0], [0, 0, 1, 0], [], []>} : vector<8x8xbf16>, vector<10x8xbf16>, vector<8x10xf32> -> vector<8x10xf32>
    %cst_20 = arith.constant 0.353553385 : f32
    %26 = vector.broadcast %cst_20 : f32 to vector<8x10xf32>
    %27 = arith.mulf %25, %26 : vector<8x10xf32>
    %cst_21 = arith.constant dense<0xFF800000> : vector<8xf32>
    %28 = vector.multi_reduction <maximumf>, %27, %cst_21 [1] : vector<8x10xf32> to vector<8xf32>
    %29 = vector.shape_cast %28 : vector<8xf32> to vector<8x1xf32>
    %30 = vector.broadcast %29 : vector<8x1xf32> to vector<8x10xf32>
    %31 = arith.subf %27, %30 : vector<8x10xf32>
    %32 = math.exp %31 : vector<8x10xf32>
    %cst_22 = arith.constant dense<0.000000e+00> : vector<8xf32>
    %33 = vector.multi_reduction <add>, %32, %cst_22 [1] : vector<8x10xf32> to vector<8xf32>
    %34 = vector.shape_cast %33 : vector<8xf32> to vector<8x1xf32>
    %35 = tpu.reciprocal %34 {approx = true} : vector<8x1xf32> -> vector<8x1xf32>
    %36 = vector.broadcast %35 : vector<8x1xf32> to vector<8x10xf32>
    %37 = arith.mulf %32, %36 : vector<8x10xf32>
    %38 = arith.truncf %37 : vector<8x10xf32> to vector<8x10xbf16>
    %39 = vector.extract_strided_slice %20 {offsets = [0, 0], sizes = [10, 8], strides = [1, 1]} : vector<10x32xf32> to vector<10x8xf32>
    %40 = arith.truncf %39 : vector<10x8xf32> to vector<10x8xbf16>
    %cst_23 = arith.constant dense<0.000000e+00> : vector<8x8xf32>
    %41 = tpu.matmul %38, %40, %cst_23 {dimension_numbers = #tpu.dot_dimension_numbers<[1], [0], [0], [1], [0, 0, 1, 1], [], []>} : vector<8x10xbf16>, vector<10x8xbf16>, vector<8x8xf32> -> vector<8x8xf32>
    %42 = vector.extract_strided_slice %21 {offsets = [0, 8], sizes = [8, 8], strides = [1, 1]} : vector<8x32xbf16> to vector<8x8xbf16>
    %43 = vector.extract_strided_slice %22 {offsets = [0, 8], sizes = [10, 8], strides = [1, 1]} : vector<10x32xbf16> to vector<10x8xbf16>
    %cst_24 = arith.constant dense<0.000000e+00> : vector<8x10xf32>
    %44 = tpu.matmul %42, %43, %cst_24 {dimension_numbers = #tpu.dot_dimension_numbers<[1], [1], [0], [0], [0, 0, 1, 0], [], []>} : vector<8x8xbf16>, vector<10x8xbf16>, vector<8x10xf32> -> vector<8x10xf32>
    %cst_25 = arith.constant 0.353553385 : f32
    %45 = vector.broadcast %cst_25 : f32 to vector<8x10xf32>
    %46 = arith.mulf %44, %45 : vector<8x10xf32>
    %cst_26 = arith.constant dense<0xFF800000> : vector<8xf32>
    %47 = vector.multi_reduction <maximumf>, %46, %cst_26 [1] : vector<8x10xf32> to vector<8xf32>
    %48 = vector.shape_cast %47 : vector<8xf32> to vector<8x1xf32>
    %49 = vector.broadcast %48 : vector<8x1xf32> to vector<8x10xf32>
    %50 = arith.subf %46, %49 : vector<8x10xf32>
    %51 = math.exp %50 : vector<8x10xf32>
    %cst_27 = arith.constant dense<0.000000e+00> : vector<8xf32>
    %52 = vector.multi_reduction <add>, %51, %cst_27 [1] : vector<8x10xf32> to vector<8xf32>
    %53 = vector.shape_cast %52 : vector<8xf32> to vector<8x1xf32>
    %54 = tpu.reciprocal %53 {approx = true} : vector<8x1xf32> -> vector<8x1xf32>
    %55 = vector.broadcast %54 : vector<8x1xf32> to vector<8x10xf32>
    %56 = arith.mulf %51, %55 : vector<8x10xf32>
    %57 = arith.truncf %56 : vector<8x10xf32> to vector<8x10xbf16>
    %58 = vector.extract_strided_slice %20 {offsets = [0, 8], sizes = [10, 8], strides = [1, 1]} : vector<10x32xf32> to vector<10x8xf32>
    %59 = arith.truncf %58 : vector<10x8xf32> to vector<10x8xbf16>
    %cst_28 = arith.constant dense<0.000000e+00> : vector<8x8xf32>
    %60 = tpu.matmul %57, %59, %cst_28 {dimension_numbers = #tpu.dot_dimension_numbers<[1], [0], [0], [1], [0, 0, 1, 1], [], []>} : vector<8x10xbf16>, vector<10x8xbf16>, vector<8x8xf32> -> vector<8x8xf32>
    %61 = vector.extract_strided_slice %21 {offsets = [0, 16], sizes = [8, 8], strides = [1, 1]} : vector<8x32xbf16> to vector<8x8xbf16>
    %62 = vector.extract_strided_slice %22 {offsets = [0, 16], sizes = [10, 8], strides = [1, 1]} : vector<10x32xbf16> to vector<10x8xbf16>
    %cst_29 = arith.constant dense<0.000000e+00> : vector<8x10xf32>
    %63 = tpu.matmul %61, %62, %cst_29 {dimension_numbers = #tpu.dot_dimension_numbers<[1], [1], [0], [0], [0, 0, 1, 0], [], []>} : vector<8x8xbf16>, vector<10x8xbf16>, vector<8x10xf32> -> vector<8x10xf32>
    %cst_30 = arith.constant 0.353553385 : f32
    %64 = vector.broadcast %cst_30 : f32 to vector<8x10xf32>
    %65 = arith.mulf %63, %64 : vector<8x10xf32>
    %cst_31 = arith.constant dense<0xFF800000> : vector<8xf32>
    %66 = vector.multi_reduction <maximumf>, %65, %cst_31 [1] : vector<8x10xf32> to vector<8xf32>
    %67 = vector.shape_cast %66 : vector<8xf32> to vector<8x1xf32>
    %68 = vector.broadcast %67 : vector<8x1xf32> to vector<8x10xf32>
    %69 = arith.subf %65, %68 : vector<8x10xf32>
    %70 = math.exp %69 : vector<8x10xf32>
    %cst_32 = arith.constant dense<0.000000e+00> : vector<8xf32>
    %71 = vector.multi_reduction <add>, %70, %cst_32 [1] : vector<8x10xf32> to vector<8xf32>
    %72 = vector.shape_cast %71 : vector<8xf32> to vector<8x1xf32>
    %73 = tpu.reciprocal %72 {approx = true} : vector<8x1xf32> -> vector<8x1xf32>
    %74 = vector.broadcast %73 : vector<8x1xf32> to vector<8x10xf32>
    %75 = arith.mulf %70, %74 : vector<8x10xf32>
    %76 = arith.truncf %75 : vector<8x10xf32> to vector<8x10xbf16>
    %77 = vector.extract_strided_slice %20 {offsets = [0, 16], sizes = [10, 8], strides = [1, 1]} : vector<10x32xf32> to vector<10x8xf32>
    %78 = arith.truncf %77 : vector<10x8xf32> to vector<10x8xbf16>
    %cst_33 = arith.constant dense<0.000000e+00> : vector<8x8xf32>
    %79 = tpu.matmul %76, %78, %cst_33 {dimension_numbers = #tpu.dot_dimension_numbers<[1], [0], [0], [1], [0, 0, 1, 1], [], []>} : vector<8x10xbf16>, vector<10x8xbf16>, vector<8x8xf32> -> vector<8x8xf32>
    %80 = vector.extract_strided_slice %21 {offsets = [0, 24], sizes = [8, 8], strides = [1, 1]} : vector<8x32xbf16> to vector<8x8xbf16>
    %81 = vector.extract_strided_slice %22 {offsets = [0, 24], sizes = [10, 8], strides = [1, 1]} : vector<10x32xbf16> to vector<10x8xbf16>
    %cst_34 = arith.constant dense<0.000000e+00> : vector<8x10xf32>
    %82 = tpu.matmul %80, %81, %cst_34 {dimension_numbers = #tpu.dot_dimension_numbers<[1], [1], [0], [0], [0, 0, 1, 0], [], []>} : vector<8x8xbf16>, vector<10x8xbf16>, vector<8x10xf32> -> vector<8x10xf32>
    %cst_35 = arith.constant 0.353553385 : f32
    %83 = vector.broadcast %cst_35 : f32 to vector<8x10xf32>
    %84 = arith.mulf %82, %83 : vector<8x10xf32>
    %cst_36 = arith.constant dense<0xFF800000> : vector<8xf32>
    %85 = vector.multi_reduction <maximumf>, %84, %cst_36 [1] : vector<8x10xf32> to vector<8xf32>
    %86 = vector.shape_cast %85 : vector<8xf32> to vector<8x1xf32>
    %87 = vector.broadcast %86 : vector<8x1xf32> to vector<8x10xf32>
    %88 = arith.subf %84, %87 : vector<8x10xf32>
    %89 = math.exp %88 : vector<8x10xf32>
    %cst_37 = arith.constant dense<0.000000e+00> : vector<8xf32>
    %90 = vector.multi_reduction <add>, %89, %cst_37 [1] : vector<8x10xf32> to vector<8xf32>
    %91 = vector.shape_cast %90 : vector<8xf32> to vector<8x1xf32>
    %92 = tpu.reciprocal %91 {approx = true} : vector<8x1xf32> -> vector<8x1xf32>
    %93 = vector.broadcast %92 : vector<8x1xf32> to vector<8x10xf32>
    %94 = arith.mulf %89, %93 : vector<8x10xf32>
    %95 = arith.truncf %94 : vector<8x10xf32> to vector<8x10xbf16>
    %96 = vector.extract_strided_slice %20 {offsets = [0, 24], sizes = [10, 8], strides = [1, 1]} : vector<10x32xf32> to vector<10x8xf32>
    %97 = arith.truncf %96 : vector<10x8xf32> to vector<10x8xbf16>
    %cst_38 = arith.constant dense<0.000000e+00> : vector<8x8xf32>
    %98 = tpu.matmul %95, %97, %cst_38 {dimension_numbers = #tpu.dot_dimension_numbers<[1], [0], [0], [1], [0, 0, 1, 1], [], []>} : vector<8x10xbf16>, vector<10x8xbf16>, vector<8x8xf32> -> vector<8x8xf32>
    %99 = tpu.concatenate %41, %60, %79, %98 in 1 : vector<8x8xf32>, vector<8x8xf32>, vector<8x8xf32>, vector<8x8xf32> -> vector<8x32xf32>
    %100 = arith.truncf %99 : vector<8x32xf32> to vector<8x32xbf16>
    %c0_39 = arith.constant 0 : index
    %c0_40 = arith.constant 0 : index
    %101 = vector.load %arg9[%c0_39, %c0_40] : memref<32x32xbf16, #tpu.memory_space<vmem>>, vector<32x32xbf16>
    %cst_41 = arith.constant dense<0.000000e+00> : vector<8x32xf32>
    %102 = tpu.matmul %100, %101, %cst_41 {dimension_numbers = #tpu.dot_dimension_numbers<[1], [0], [0], [1], [0, 0, 1, 1], [], []>} : vector<8x32xbf16>, vector<32x32xbf16>, vector<8x32xf32> -> vector<8x32xf32>
    %c0_42 = arith.constant 0 : index
    %c0_43 = arith.constant 0 : index
    %103 = vector.load %arg10[%c0_42, %c0_43] : memref<1x32xf32, #tpu.memory_space<vmem>>, vector<1x32xf32>
    %104 = vector.broadcast %103 : vector<1x32xf32> to vector<8x32xf32>
    %105 = arith.addf %102, %104 : vector<8x32xf32>
    %106 = arith.addf %1, %105 : vector<8x32xf32>
    %cst_44 = arith.constant dense<0.000000e+00> : vector<8xf32>
    %107 = vector.multi_reduction <add>, %106, %cst_44 [1] : vector<8x32xf32> to vector<8xf32>
    %108 = vector.shape_cast %107 : vector<8xf32> to vector<8x1xf32>
    %cst_45 = arith.constant 3.200000e+01 : f32
    %109 = vector.broadcast %cst_45 : f32 to vector<8x1xf32>
    %110 = arith.divf %108, %109 : vector<8x1xf32>
    %111 = vector.broadcast %110 : vector<8x1xf32> to vector<8x32xf32>
    %112 = arith.subf %106, %111 : vector<8x32xf32>
    %113 = arith.mulf %112, %112 : vector<8x32xf32>
    %cst_46 = arith.constant dense<0.000000e+00> : vector<8xf32>
    %114 = vector.multi_reduction <add>, %113, %cst_46 [1] : vector<8x32xf32> to vector<8xf32>
    %115 = vector.shape_cast %114 : vector<8xf32> to vector<8x1xf32>
    %cst_47 = arith.constant 3.200000e+01 : f32
    %116 = vector.broadcast %cst_47 : f32 to vector<8x1xf32>
    %117 = arith.divf %115, %116 : vector<8x1xf32>
    %cst_48 = arith.constant 9.99999974E-6 : f32
    %118 = vector.broadcast %cst_48 : f32 to vector<8x1xf32>
    %119 = arith.addf %117, %118 : vector<8x1xf32>
    %120 = math.rsqrt %119 : vector<8x1xf32>
    %121 = vector.broadcast %120 : vector<8x1xf32> to vector<8x32xf32>
    %122 = arith.mulf %112, %121 : vector<8x32xf32>
    %c0_49 = arith.constant 0 : index
    %c0_50 = arith.constant 0 : index
    %123 = vector.load %arg11[%c0_49, %c0_50] : memref<1x32xf32, #tpu.memory_space<vmem>>, vector<1x32xf32>
    %124 = vector.broadcast %123 : vector<1x32xf32> to vector<8x32xf32>
    %125 = arith.mulf %122, %124 : vector<8x32xf32>
    %c0_51 = arith.constant 0 : index
    %c0_52 = arith.constant 0 : index
    %126 = vector.load %arg12[%c0_51, %c0_52] : memref<1x32xf32, #tpu.memory_space<vmem>>, vector<1x32xf32>
    %127 = vector.broadcast %126 : vector<1x32xf32> to vector<8x32xf32>
    %128 = arith.addf %125, %127 : vector<8x32xf32>
    %c0_53 = arith.constant 0 : index
    %c0_54 = arith.constant 0 : index
    %c0_55 = arith.constant 0 : index
    %129 = vector.load %arg13[%c0_53, %c0_54, %c0_55] : memref<1x8x32xf32, #tpu.memory_space<vmem>>, vector<1x8x32xf32>
    %130 = vector.shape_cast %129 : vector<1x8x32xf32> to vector<8x32xf32>
    %131 = vector.shape_cast %128 : vector<8x32xf32> to vector<1x8x32xf32>
    tpu.vector_store %arg13[%c0_53, %c0_54, %c0_55], %131 {strides = array<i32>} : memref<1x8x32xf32, #tpu.memory_space<vmem>>, vector<1x8x32xf32>,
    return
  }
  func.func @transform_0(%arg0: i32) -> (i32, i32, i32) {
    %c0_i32 = arith.constant 0 : i32
    %c0_i32_0 = arith.constant 0 : i32
    %c0_i32_1 = arith.constant 0 : i32
    return %arg0, %c0_i32, %c0_i32_0 : i32, i32, i32
  }
  func.func @transform_1(%arg0: i32) -> (i32, i32, i32) {
    %c0_i32 = arith.constant 0 : i32
    %c0_i32_0 = arith.constant 0 : i32
    %c0_i32_1 = arith.constant 0 : i32
    %c0_i32_2 = arith.constant 0 : i32
    return %c0_i32, %c0_i32_0, %c0_i32_1 : i32, i32, i32
  }
  func.func @transform_2(%arg0: i32) -> (i32, i32) {
    %c0_i32 = arith.constant 0 : i32
    %c0_i32_0 = arith.constant 0 : i32
    %c0_i32_1 = arith.constant 0 : i32
    return %c0_i32, %c0_i32_0 : i32, i32
  }
  func.func @transform_3(%arg0: i32) -> (i32, i32) {
    %c0_i32 = arith.constant 0 : i32
    %c0_i32_0 = arith.constant 0 : i32
    %c0_i32_1 = arith.constant 0 : i32
    return %c0_i32, %c0_i32_0 : i32, i32
  }
  func.func @transform_4(%arg0: i32) -> (i32, i32) {
    %c0_i32 = arith.constant 0 : i32
    %c0_i32_0 = arith.constant 0 : i32
    %c0_i32_1 = arith.constant 0 : i32
    return %c0_i32, %c0_i32_0 : i32, i32
  }
  func.func @transform_5(%arg0: i32) -> (i32, i32) {
    %c0_i32 = arith.constant 0 : i32
    %c0_i32_0 = arith.constant 0 : i32
    %c0_i32_1 = arith.constant 0 : i32
    return %c0_i32, %c0_i32_0 : i32, i32
  }
  func.func @transform_6(%arg0: i32) -> (i32, i32) {
    %c0_i32 = arith.constant 0 : i32
    %c0_i32_0 = arith.constant 0 : i32
    %c0_i32_1 = arith.constant 0 : i32
    return %c0_i32, %c0_i32_0 : i32, i32
  }
  func.func @transform_7(%arg0: i32) -> (i32, i32) {
    %c0_i32 = arith.constant 0 : i32
    %c0_i32_0 = arith.constant 0 : i32
    %c0_i32_1 = arith.constant 0 : i32
    return %c0_i32, %c0_i32_0 : i32, i32
  }
  func.func @transform_8(%arg0: i32) -> (i32, i32) {
    %c0_i32 = arith.constant 0 : i32
    %c0_i32_0 = arith.constant 0 : i32
    %c0_i32_1 = arith.constant 0 : i32
    return %c0_i32, %c0_i32_0 : i32, i32
  }
  func.func @transform_9(%arg0: i32) -> (i32, i32) {
    %c0_i32 = arith.constant 0 : i32
    %c0_i32_0 = arith.constant 0 : i32
    %c0_i32_1 = arith.constant 0 : i32
    return %c0_i32, %c0_i32_0 : i32, i32
  }
  func.func @transform_10(%arg0: i32) -> (i32, i32) {
    %c0_i32 = arith.constant 0 : i32
    %c0_i32_0 = arith.constant 0 : i32
    %c0_i32_1 = arith.constant 0 : i32
    return %c0_i32, %c0_i32_0 : i32, i32
  }
  func.func @transform_11(%arg0: i32) -> (i32, i32) {
    %c0_i32 = arith.constant 0 : i32
    %c0_i32_0 = arith.constant 0 : i32
    %c0_i32_1 = arith.constant 0 : i32
    return %c0_i32, %c0_i32_0 : i32, i32
  }
  func.func @transform_12(%arg0: i32) -> (i32, i32, i32) {
    %c0_i32 = arith.constant 0 : i32
    %c0_i32_0 = arith.constant 0 : i32
    %c0_i32_1 = arith.constant 0 : i32
    return %arg0, %c0_i32, %c0_i32_0 : i32, i32, i32
  }
}

module attributes {stable_mosaic.version = 11 : i64} {
  func.func @_ffn_block_kernel(%arg0: i32, %arg1: memref<16x32xf32, #tpu.memory_space<vmem>>, %arg2: memref<32x64xbf16, #tpu.memory_space<vmem>>, %arg3: memref<1x64xf32, #tpu.memory_space<vmem>>, %arg4: memref<64x32xbf16, #tpu.memory_space<vmem>>, %arg5: memref<1x32xf32, #tpu.memory_space<vmem>>, %arg6: memref<1x32xf32, #tpu.memory_space<vmem>>, %arg7: memref<1x32xf32, #tpu.memory_space<vmem>>, %arg8: memref<16x32xf32, #tpu.memory_space<vmem>>) attributes {dimension_semantics = [#tpu.dimension_semantics<parallel>], iteration_bounds = array<i64: 1>, scalar_prefetch = 0 : i64, scratch_operands = 0 : i64, tpu.core_type = #tpu.core_type<tc>, window_params = [{transform_indices = @transform_0, window_bounds = array<i64: 16, 32>}, {pipeline_mode = #tpu.pipeline_mode<synchronous>, transform_indices = @transform_1, window_bounds = array<i64: 32, 64>}, {pipeline_mode = #tpu.pipeline_mode<synchronous>, transform_indices = @transform_2, window_bounds = array<i64: 1, 64>}, {pipeline_mode = #tpu.pipeline_mode<synchronous>, transform_indices = @transform_3, window_bounds = array<i64: 64, 32>}, {pipeline_mode = #tpu.pipeline_mode<synchronous>, transform_indices = @transform_4, window_bounds = array<i64: 1, 32>}, {pipeline_mode = #tpu.pipeline_mode<synchronous>, transform_indices = @transform_5, window_bounds = array<i64: 1, 32>}, {pipeline_mode = #tpu.pipeline_mode<synchronous>, transform_indices = @transform_6, window_bounds = array<i64: 1, 32>}, {transform_indices = @transform_7, window_bounds = array<i64: 16, 32>}]} {
    %c0 = arith.constant 0 : index
    %c0_0 = arith.constant 0 : index
    %0 = vector.load %arg1[%c0, %c0_0] : memref<16x32xf32, #tpu.memory_space<vmem>>, vector<16x32xf32>
    %1 = arith.truncf %0 : vector<16x32xf32> to vector<16x32xbf16>
    %c0_1 = arith.constant 0 : index
    %c0_2 = arith.constant 0 : index
    %2 = vector.load %arg2[%c0_1, %c0_2] : memref<32x64xbf16, #tpu.memory_space<vmem>>, vector<32x64xbf16>
    %cst = arith.constant dense<0.000000e+00> : vector<16x64xf32>
    %3 = tpu.matmul %1, %2, %cst {dimension_numbers = #tpu.dot_dimension_numbers<[1], [0], [0], [1], [0, 0, 1, 1], [], []>} : vector<16x32xbf16>, vector<32x64xbf16>, vector<16x64xf32> -> vector<16x64xf32>
    %c0_3 = arith.constant 0 : index
    %c0_4 = arith.constant 0 : index
    %4 = vector.load %arg3[%c0_3, %c0_4] : memref<1x64xf32, #tpu.memory_space<vmem>>, vector<1x64xf32>
    %5 = vector.broadcast %4 : vector<1x64xf32> to vector<16x64xf32>
    %6 = arith.addf %3, %5 : vector<16x64xf32>
    %cst_5 = arith.constant 0.000000e+00 : f32
    %7 = vector.broadcast %cst_5 : f32 to vector<16x64xf32>
    %8 = arith.maximumf %6, %7 : vector<16x64xf32>
    %9 = arith.truncf %8 : vector<16x64xf32> to vector<16x64xbf16>
    %c0_6 = arith.constant 0 : index
    %c0_7 = arith.constant 0 : index
    %10 = vector.load %arg4[%c0_6, %c0_7] : memref<64x32xbf16, #tpu.memory_space<vmem>>, vector<64x32xbf16>
    %cst_8 = arith.constant dense<0.000000e+00> : vector<16x32xf32>
    %11 = tpu.matmul %9, %10, %cst_8 {dimension_numbers = #tpu.dot_dimension_numbers<[1], [0], [0], [1], [0, 0, 1, 1], [], []>} : vector<16x64xbf16>, vector<64x32xbf16>, vector<16x32xf32> -> vector<16x32xf32>
    %c0_9 = arith.constant 0 : index
    %c0_10 = arith.constant 0 : index
    %12 = vector.load %arg5[%c0_9, %c0_10] : memref<1x32xf32, #tpu.memory_space<vmem>>, vector<1x32xf32>
    %13 = vector.broadcast %12 : vector<1x32xf32> to vector<16x32xf32>
    %14 = arith.addf %11, %13 : vector<16x32xf32>
    %15 = arith.addf %0, %14 : vector<16x32xf32>
    %cst_11 = arith.constant dense<0.000000e+00> : vector<16xf32>
    %16 = vector.multi_reduction <add>, %15, %cst_11 [1] : vector<16x32xf32> to vector<16xf32>
    %17 = vector.shape_cast %16 : vector<16xf32> to vector<16x1xf32>
    %cst_12 = arith.constant 3.200000e+01 : f32
    %18 = vector.broadcast %cst_12 : f32 to vector<16x1xf32>
    %19 = arith.divf %17, %18 : vector<16x1xf32>
    %20 = vector.broadcast %19 : vector<16x1xf32> to vector<16x32xf32>
    %21 = arith.subf %15, %20 : vector<16x32xf32>
    %22 = arith.mulf %21, %21 : vector<16x32xf32>
    %cst_13 = arith.constant dense<0.000000e+00> : vector<16xf32>
    %23 = vector.multi_reduction <add>, %22, %cst_13 [1] : vector<16x32xf32> to vector<16xf32>
    %24 = vector.shape_cast %23 : vector<16xf32> to vector<16x1xf32>
    %cst_14 = arith.constant 3.200000e+01 : f32
    %25 = vector.broadcast %cst_14 : f32 to vector<16x1xf32>
    %26 = arith.divf %24, %25 : vector<16x1xf32>
    %cst_15 = arith.constant 9.99999974E-6 : f32
    %27 = vector.broadcast %cst_15 : f32 to vector<16x1xf32>
    %28 = arith.addf %26, %27 : vector<16x1xf32>
    %29 = math.rsqrt %28 : vector<16x1xf32>
    %30 = vector.broadcast %29 : vector<16x1xf32> to vector<16x32xf32>
    %31 = arith.mulf %21, %30 : vector<16x32xf32>
    %c0_16 = arith.constant 0 : index
    %c0_17 = arith.constant 0 : index
    %32 = vector.load %arg6[%c0_16, %c0_17] : memref<1x32xf32, #tpu.memory_space<vmem>>, vector<1x32xf32>
    %33 = vector.broadcast %32 : vector<1x32xf32> to vector<16x32xf32>
    %34 = arith.mulf %31, %33 : vector<16x32xf32>
    %c0_18 = arith.constant 0 : index
    %c0_19 = arith.constant 0 : index
    %35 = vector.load %arg7[%c0_18, %c0_19] : memref<1x32xf32, #tpu.memory_space<vmem>>, vector<1x32xf32>
    %36 = vector.broadcast %35 : vector<1x32xf32> to vector<16x32xf32>
    %37 = arith.addf %34, %36 : vector<16x32xf32>
    %c0_20 = arith.constant 0 : index
    %c0_21 = arith.constant 0 : index
    %38 = vector.load %arg8[%c0_20, %c0_21] : memref<16x32xf32, #tpu.memory_space<vmem>>, vector<16x32xf32>
    tpu.vector_store %arg8[%c0_20, %c0_21], %37 {strides = array<i32>} : memref<16x32xf32, #tpu.memory_space<vmem>>, vector<16x32xf32>,
    return
  }
  func.func @transform_0(%arg0: i32) -> (i32, i32) {
    %c0_i32 = arith.constant 0 : i32
    %c0_i32_0 = arith.constant 0 : i32
    return %arg0, %c0_i32 : i32, i32
  }
  func.func @transform_1(%arg0: i32) -> (i32, i32) {
    %c0_i32 = arith.constant 0 : i32
    %c0_i32_0 = arith.constant 0 : i32
    %c0_i32_1 = arith.constant 0 : i32
    return %c0_i32, %c0_i32_0 : i32, i32
  }
  func.func @transform_2(%arg0: i32) -> (i32, i32) {
    %c0_i32 = arith.constant 0 : i32
    %c0_i32_0 = arith.constant 0 : i32
    %c0_i32_1 = arith.constant 0 : i32
    return %c0_i32, %c0_i32_0 : i32, i32
  }
  func.func @transform_3(%arg0: i32) -> (i32, i32) {
    %c0_i32 = arith.constant 0 : i32
    %c0_i32_0 = arith.constant 0 : i32
    %c0_i32_1 = arith.constant 0 : i32
    return %c0_i32, %c0_i32_0 : i32, i32
  }
  func.func @transform_4(%arg0: i32) -> (i32, i32) {
    %c0_i32 = arith.constant 0 : i32
    %c0_i32_0 = arith.constant 0 : i32
    %c0_i32_1 = arith.constant 0 : i32
    return %c0_i32, %c0_i32_0 : i32, i32
  }
  func.func @transform_5(%arg0: i32) -> (i32, i32) {
    %c0_i32 = arith.constant 0 : i32
    %c0_i32_0 = arith.constant 0 : i32
    %c0_i32_1 = arith.constant 0 : i32
    return %c0_i32, %c0_i32_0 : i32, i32
  }
  func.func @transform_6(%arg0: i32) -> (i32, i32) {
    %c0_i32 = arith.constant 0 : i32
    %c0_i32_0 = arith.constant 0 : i32
    %c0_i32_1 = arith.constant 0 : i32
    return %c0_i32, %c0_i32_0 : i32, i32
  }
  func.func @transform_7(%arg0: i32) -> (i32, i32) {
    %c0_i32 = arith.constant 0 : i32
    %c0_i32_0 = arith.constant 0 : i32
    return %arg0, %c0_i32 : i32, i32
  }
}

module attributes {stable_mosaic.version = 11 : i64} {
  func.func @_linear_softmax_kernel(%arg0: i32, %arg1: memref<16x32xf32, #tpu.memory_space<vmem>>, %arg2: memref<32x32xbf16, #tpu.memory_space<vmem>>, %arg3: memref<1x32xf32, #tpu.memory_space<vmem>>, %arg4: memref<16x32xf32, #tpu.memory_space<vmem>>) attributes {dimension_semantics = [#tpu.dimension_semantics<parallel>], iteration_bounds = array<i64: 1>, scalar_prefetch = 0 : i64, scratch_operands = 0 : i64, tpu.core_type = #tpu.core_type<tc>, window_params = [{transform_indices = @transform_0, window_bounds = array<i64: 16, 32>}, {pipeline_mode = #tpu.pipeline_mode<synchronous>, transform_indices = @transform_1, window_bounds = array<i64: 32, 32>}, {pipeline_mode = #tpu.pipeline_mode<synchronous>, transform_indices = @transform_2, window_bounds = array<i64: 1, 32>}, {transform_indices = @transform_3, window_bounds = array<i64: 16, 32>}]} {
    %c0 = arith.constant 0 : index
    %c0_0 = arith.constant 0 : index
    %0 = vector.load %arg1[%c0, %c0_0] : memref<16x32xf32, #tpu.memory_space<vmem>>, vector<16x32xf32>
    %1 = arith.truncf %0 : vector<16x32xf32> to vector<16x32xbf16>
    %c0_1 = arith.constant 0 : index
    %c0_2 = arith.constant 0 : index
    %2 = vector.load %arg2[%c0_1, %c0_2] : memref<32x32xbf16, #tpu.memory_space<vmem>>, vector<32x32xbf16>
    %cst = arith.constant dense<0.000000e+00> : vector<16x32xf32>
    %3 = tpu.matmul %1, %2, %cst {dimension_numbers = #tpu.dot_dimension_numbers<[1], [0], [0], [1], [0, 0, 1, 1], [], []>} : vector<16x32xbf16>, vector<32x32xbf16>, vector<16x32xf32> -> vector<16x32xf32>
    %c0_3 = arith.constant 0 : index
    %c0_4 = arith.constant 0 : index
    %4 = vector.load %arg3[%c0_3, %c0_4] : memref<1x32xf32, #tpu.memory_space<vmem>>, vector<1x32xf32>
    %5 = vector.broadcast %4 : vector<1x32xf32> to vector<16x32xf32>
    %6 = arith.addf %3, %5 : vector<16x32xf32>
    %cst_5 = arith.constant dense<0xFF800000> : vector<16xf32>
    %7 = vector.multi_reduction <maximumf>, %6, %cst_5 [1] : vector<16x32xf32> to vector<16xf32>
    %8 = vector.shape_cast %7 : vector<16xf32> to vector<16x1xf32>
    %9 = vector.broadcast %8 : vector<16x1xf32> to vector<16x32xf32>
    %10 = arith.subf %6, %9 : vector<16x32xf32>
    %11 = math.exp %10 : vector<16x32xf32>
    %cst_6 = arith.constant dense<0.000000e+00> : vector<16xf32>
    %12 = vector.multi_reduction <add>, %11, %cst_6 [1] : vector<16x32xf32> to vector<16xf32>
    %13 = vector.shape_cast %12 : vector<16xf32> to vector<16x1xf32>
    %14 = vector.broadcast %13 : vector<16x1xf32> to vector<16x32xf32>
    %15 = arith.divf %11, %14 : vector<16x32xf32>
    %c0_7 = arith.constant 0 : index
    %c0_8 = arith.constant 0 : index
    %16 = vector.load %arg4[%c0_7, %c0_8] : memref<16x32xf32, #tpu.memory_space<vmem>>, vector<16x32xf32>
    tpu.vector_store %arg4[%c0_7, %c0_8], %15 {strides = array<i32>} : memref<16x32xf32, #tpu.memory_space<vmem>>, vector<16x32xf32>,
    return
  }
  func.func @transform_0(%arg0: i32) -> (i32, i32) {
    %c0_i32 = arith.constant 0 : i32
    %c0_i32_0 = arith.constant 0 : i32
    return %arg0, %c0_i32 : i32, i32
  }
  func.func @transform_1(%arg0: i32) -> (i32, i32) {
    %c0_i32 = arith.constant 0 : i32
    %c0_i32_0 = arith.constant 0 : i32
    %c0_i32_1 = arith.constant 0 : i32
    return %c0_i32, %c0_i32_0 : i32, i32
  }
  func.func @transform_2(%arg0: i32) -> (i32, i32) {
    %c0_i32 = arith.constant 0 : i32
    %c0_i32_0 = arith.constant 0 : i32
    %c0_i32_1 = arith.constant 0 : i32
    return %c0_i32, %c0_i32_0 : i32, i32
  }
  func.func @transform_3(%arg0: i32) -> (i32, i32) {
    %c0_i32 = arith.constant 0 : i32
    %c0_i32_0 = arith.constant 0 : i32
    return %arg0, %c0_i32 : i32, i32
  }
}

</mosaic_0001>

<bundles_post_ra>
// kernel: transformer_forward.13
= control target key start
LH: loop header
LB: loop body
LE: loop exit
PB: predicated region body
PF: predicated region fallthrough
CT: control target
= control target key end

     0   :  { %v181_v1 = vmov 0.0   ;;  %vm182_vm0 = vmmov 0   ;;  %s240_s0 = inlined_call_operand.vmem [shape: f32[16,32], index: 0, kind: input, shape index: {}]   ;;  %s241_s1 = inlined_call_operand.vmem [shape: bf16[32,32], index: 1, kind: input, shape index: {}]   ;;  %s242_s2 = inlined_call_operand.vmem [shape: f32[1,32], index: 2, kind: input, shape index: {}]   ;;  %s243_s3 = inlined_call_operand.hbm [shape: f32[16,32], index: 3, kind: output, shape index: {}]  }
   0x1   :  { %v147_v0 = vld [vmem:[%s241_s1] sm:$0xff]   ;;  %134 = vmatprep.subr.bf16.mxu0 %v181_v1  ;;  %v148_v2 = vld [vmem:[%s241_s1 + $0x8] sm:$0xff]   ;;  %138 = vmatprep.mubr.msk.bf16.mxu0 %vm182_vm0, %v181_v1 }
   0x2   :  { %135 = vmatpush3.bf16.msra.mxu0 %v147_v0  ;;  %v16_v3 = vld [vmem:[%s240_s0] sm:$0xff]  ;;  %v17_v4 = vld [vmem:[%s240_s0 + $0x8] sm:$0xff] }
   0x3   :  { %136 = vmatprep.subr.bf16.mxu0 %v181_v1 }
   0x4   :  { %8 = vsyncpa [#allocation3], 0  ;;  %v18_v5 = vpack.c.bf16 %v17_v4, %v16_v3  ;;  %vm42_vm1 = vcmask 261120   ;;  %v127_v6 = vld [vmem:[%s242_s2] ss:$0 sm:$0xff]  ;;  %s183_s0 = smov [#allocation2]  }
   0x5   :  { %s116_s1 = sshll.u32 %s183_s0, 4  ;;  %s117_s1 = int_to_ptr.vmem [resolvable:$true] %s116_s1 }
   0x6   :  { %137 = vmatpush3.bf16.msra.mxu0 %v148_v2  ;;  %s157_s2 = scalar_lea.vmem %s117_s1, 256  ;;  %p162_p1 = scmp.lt.s32.totalorder %s117_s1, %s117_s1 }
   0x7   :  { %p158_p0 = scmp.ne.s32.totalorder %s117_s1, %s157_s2  ;;  %p163_p2 = scmp.lt.s32.totalorder %s157_s2, %s157_s2 }
   0x9   :  { %139 = vmatmul.mubr.msk.bf16.vlgmr.msra.gmra.mrb[0].mxu0 %vm42_vm1, %v18_v5  ;;  %p164_p3 = por %p163_p2, %p162_p1 }
   0xb   :  { %p165_p4 = pnand %p164_p3, %p158_p0 }
  0xdc   :  { %v80_v7 = vpop.f32.mrb[0].mxu0 }
  0xdd   :  { %v81_v8 = vadd.f32 %v127_v6, %v80_v7  ;;  %v140_v9 = vpop.f32.mrb[1].mxu0 }
  0xde   :  { %v83_v10 = vpop.f32.mrb[2].mxu0 }
  0xdf   :  { %v84_v11 = vadd.f32 %v127_v6, %v83_v10  ;;  %v141_v12 = vpop.f32.mrb[3].mxu0  ;;  %v87_v13 = vsel %vm42_vm1, %v81_v8, -inf }
  0xe0   :  { %88 = vmax.xlane.f32.xlu0 %v87_v13 }
  0xe1   :  { %v90_v14 = vsel %vm42_vm1, %v84_v11, -inf }
  0xe4   :  { %91 = vmax.xlane.f32.xlu0 %v90_v14 }
 0x16d   :  { %v89_v15 = vpop.xlane.xlu0 %88 }
 0x16e   :  { %v93_v16 = vsub.f32 %v81_v8, %v89_v15 }
 0x170   :  { %v95_v17 = vmul.f32 1.442695, %v93_v16 }
 0x171   :  { %v92_v18 = vpop.xlane.xlu0 %91 }
 0x172   :  { %149 = vpow2.f32 %v95_v17  ;;  %v94_v19 = vsub.f32 %v84_v11, %v92_v18 }
 0x174   :  { %v97_v20 = vmul.f32 1.442695, %v94_v19 }
 0x176   :  { %151 = vpow2.f32 %v97_v20 }
 0x17c   :  { %v150_v21 = vpop.eup %149 }
 0x17d   :  { %v99_v22 = vsel %vm42_vm1, %v150_v21, 0.0 }
 0x17e   :  { %100 = vadd.xlane.f32.xlu1 %v99_v22 }
 0x180   :  { %v152_v23 = vpop.eup %151 }
 0x181   :  { %v102_v24 = vsel %vm42_vm1, %v152_v23, 0.0 }
 0x182   :  { %103 = vadd.xlane.f32.xlu1 %v102_v24 }
 0x20b   :  { %v101_v25 = vpop.xlane.xlu1 %100 }
 0x20c   :  { %153 = vrcp.f32 %v101_v25 }
 0x20f   :  { %v104_v26 = vpop.xlane.xlu1 %103 }
 0x210   :  { %155 = vrcp.f32 %v104_v26 }
 0x216   :  { %v154_v27 = vpop.eup %153 }
 0x217   :  { %v106_v28 = vmul.f32 %v154_v27, %v150_v21 }
 0x219   :  { %109 = vst.msk [vmem:[#allocation2] sm:$0xff] %vm42_vm1, %v106_v28 }
 0x21a   :  { %v156_v29 = vpop.eup %155 }
 0x21b   :  { %v108_v30 = vmul.f32 %v156_v29, %v152_v23 }
 0x21d   :  { %110 = vst.msk [vmem:[#allocation2 + $0x8] sm:$0xff] %vm42_vm1, %v108_v30 }
 0x21e   :  { %168 = shalt.err (!%p165_p4)
}
 0x21f   :  { %s169_s24 = scalar_lea.hbm %s243_s3, 256 }
 0x220   :  { %p170_p5 = scmp.ne.s32.totalorder %s243_s3, %s169_s24  ;;  %p173_p6 = scmp.lt.u32.totalorder %s169_s24, %s243_s3 }
 0x222   :  { %p175_p7 = pnand %p173_p6, %p170_p5 }
 0x224   :  { %178 = shalt.err (!%p175_p7)
}
 0x225   :  { %s184_s29 = smov 128   ;;  %s185_s30 = smov 8  }
 0x226   :  { %122 = dma.vmem_to_hbm [thread:$0]  %s117_s1, 256, %s243_s3, [#allocation3], %s184_s29, %s184_s29, %s185_s30  }
 0x227   :  { %179 = dma.done.wait [#allocation3], 256  }
 0x228   :  { %180 = vsyncadd [#allocation3], 4294967040 }
 0x229   :  { %126 = vsyncpa [#allocation3], 1 }

// kernel: transformer_forward.9
= control target key start
LH: loop header
LB: loop body
LE: loop exit
PB: predicated region body
PF: predicated region fallthrough
CT: control target
= control target key end

     0   :  { %v290_v0 = vmov 0.0   ;;  %vm291_vm0 = vmmov 0   ;;  %vm53_vm1 = vcmask 261120   ;;  %vm140_vm2 = vcmask 523264   ;;  %s381_s1 = inlined_call_operand.vmem [shape: bf16[32,64], index: 1, kind: input, shape index: {}]   ;;  %s382_s0 = inlined_call_operand.vmem [shape: f32[16,32], index: 0, kind: input, shape index: {}]   ;;  %s383_s3 = inlined_call_operand.vmem [shape: bf16[64,32], index: 3, kind: input, shape index: {}]   ;;  %s384_s2 = inlined_call_operand.vmem [shape: f32[1,64], index: 2, kind: input, shape index: {}]   ;;  %s385_s4 = inlined_call_operand.vmem [shape: f32[1,32], index: 4, kind: input, shape index: {}]   ;;  %s386_s5 = inlined_call_operand.vmem [shape: f32[1,32], index: 5, kind: input, shape index: {}]   ;;  %s387_s6 = inlined_call_operand.vmem [shape: f32[1,32], index: 6, kind: input, shape index: {}]   ;;  %s388_s7 = inlined_call_operand.vmem [shape: f32[16,32], index: 7, kind: output, shape index: {}]  }
   0x1   :  { %258 = vmatprep.subr.bf16.mxu0 %v290_v0  ;;  %v280_v1 = vld [vmem:[%s381_s1] sm:$0xff]   ;;  %262 = vmatprep.mubr.msk.bf16.mxu0 %vm291_vm0, %v290_v0  ;;  %v281_v2 = vld [vmem:[%s381_s1 + $0x8] sm:$0xff]   ;;  %v284_v8 = vld [vmem:[%s383_s3 + $0x10] sm:$0xff]  }
   0x2   :  { %266 = vmatprep.subr.bf16.mxu1 %v290_v0  ;;  %274 = vmatprep.mubr.msk.bf16.mxu1 %vm291_vm0, %v290_v0  ;;  %v27_v3 = vld [vmem:[%s382_s0] sm:$0xff]  ;;  %v28_v4 = vld [vmem:[%s382_s0 + $0x8] sm:$0xff]  ;;  %v285_v9 = vld [vmem:[%s383_s3 + $0x18] sm:$0xff]  }
   0x3   :  { %259 = vmatpush3.bf16.msra.mxu0 %v280_v1  ;;  %v282_v5 = vld [vmem:[%s383_s3] sm:$0xff]   ;;  %v283_v6 = vld [vmem:[%s383_s3 + $0x8] sm:$0xff]   ;;  %v29_v7 = vpack.c.bf16 %v28_v4, %v27_v3 }
   0x4   :  { %260 = vmatprep.subr.bf16.mxu0 %v290_v0  ;;  %267 = vmatpush3.bf16.msra.mxu1 %v282_v5  ;;  %v238_v10 = vld [vmem:[%s384_s2] ss:$0 sm:$0xff] }
   0x5   :  { %268 = vmatprep.subr.bf16.mxu1 %v290_v0  ;;  %v242_v20 = vld [vmem:[%s385_s4] ss:$0 sm:$0xff] }
   0x6   :  { %v248_v48 = vld [vmem:[%s386_s5] ss:$0 sm:$0xff] }
   0x7   :  { %261 = vmatpush3.bf16.msra.mxu0 %v281_v2  ;;  %v249_v50 = vld [vmem:[%s387_s6] ss:$0 sm:$0xff] }
   0x8   :  { %269 = vmatpush3.bf16.msra.mxu1 %v283_v6 }
   0x9   :  { %270 = vmatprep.subr.bf16.mxu1 %v290_v0 }
   0xa   :  { %263 = vmatmul.mubr.msk.bf16.vlgmr.msra.gmra.mrb[0].mxu0 %vm53_vm1, %v29_v7 }
   0xc   :  { %271 = vmatpush3.bf16.msra.mxu1 %v284_v8 }
   0xd   :  { %272 = vmatprep.subr.bf16.mxu1 %v290_v0 }
  0x10   :  { %273 = vmatpush3.bf16.msra.mxu1 %v285_v9 }
  0xdd   :  { %v91_v11 = vpop.f32.mrb[0].mxu0 }
  0xde   :  { %v92_v12 = vadd.f32 %v238_v10, %v91_v11  ;;  %v264_v13 = vpop.f32.mrb[1].mxu0 }
  0xdf   :  { %v94_v14 = vpop.f32.mrb[2].mxu0 }
  0xe0   :  { %v95_v15 = vadd.f32 %v238_v10, %v94_v14  ;;  %v265_v16 = vpop.f32.mrb[3].mxu0  ;;  %v98_v17 = vmax.f32 %v92_v12, 0.0 }
  0xe2   :  { %v99_v18 = vmax.f32 %v95_v15, 0.0 }
  0xe4   :  { %v100_v19 = vpack.c.bf16 %v99_v18, %v98_v17 }
  0xe6   :  { %275 = vmatmul.mubr.msk.bf16.vlgmr.msra.gmra.mrb[0].mxu1 %vm140_vm2, %v100_v19 }
 0x1b9   :  { %v178_v21 = vpop.f32.mrb[0].mxu1 }
 0x1ba   :  { %v179_v22 = vadd.f32 %v242_v20, %v178_v21  ;;  %v276_v23 = vpop.f32.mrb[1].mxu1 }
 0x1bb   :  { %v181_v24 = vpop.f32.mrb[2].mxu1 }
 0x1bc   :  { %v182_v25 = vadd.f32 %v242_v20, %v181_v24  ;;  %v277_v26 = vpop.f32.mrb[3].mxu1  ;;  %v185_v27 = vadd.f32 %v179_v22, %v27_v3 }
 0x1be   :  { %v187_v28 = vsel %vm53_vm1, %v185_v27, 0.0  ;;  %v186_v29 = vadd.f32 %v182_v25, %v28_v4 }
 0x1bf   :  { %188 = vadd.xlane.f32.xlu0 %v187_v28 }
 0x1c0   :  { %v190_v30 = vsel %vm53_vm1, %v186_v29, 0.0 }
 0x1c3   :  { %191 = vadd.xlane.f32.xlu0 %v190_v30 }
 0x24c   :  { %v189_v31 = vpop.xlane.xlu0 %188 }
 0x24d   :  { %v194_v32 = vmul.f32 0.03125, %v189_v31 }
 0x24f   :  { %v196_v33 = vsub.f32 %v185_v27, %v194_v32 }
 0x250   :  { %v192_v34 = vpop.xlane.xlu0 %191 }
 0x251   :  { %v195_v35 = vmul.f32 0.03125, %v192_v34  ;;  %v198_v36 = vmul.f32 %v196_v33, %v196_v33 }
 0x253   :  { %v197_v37 = vsub.f32 %v186_v29, %v195_v35  ;;  %v200_v38 = vsel %vm53_vm1, %v198_v36, 0.0 }
 0x254   :  { %201 = vadd.xlane.f32.xlu1 %v200_v38 }
 0x255   :  { %v199_v39 = vmul.f32 %v197_v37, %v197_v37 }
 0x257   :  { %v203_v40 = vsel %vm53_vm1, %v199_v39, 0.0 }
 0x258   :  { %204 = vadd.xlane.f32.xlu1 %v203_v40 }
 0x2e1   :  { %v202_v41 = vpop.xlane.xlu1 %201 }
 0x2e2   :  { %v206_v42 = vmul.f32 0.03125, %v202_v41 }
 0x2e4   :  { %v208_v43 = vadd.f32 1e-05, %v206_v42 }
 0x2e5   :  { %v205_v44 = vpop.xlane.xlu1 %204 }
 0x2e6   :  { %286 = vrsqrt.f32 %v208_v43  ;;  %v207_v45 = vmul.f32 0.03125, %v205_v44 }
 0x2e8   :  { %v209_v46 = vadd.f32 1e-05, %v207_v45 }
 0x2ea   :  { %288 = vrsqrt.f32 %v209_v46 }
 0x2f0   :  { %v287_v47 = vpop.eup %286 }
 0x2f1   :  { %v212_v49 = vmul.f32 %v287_v47, %v196_v33 }
 0x2f3   :  { %v221_v51 = vmul.f32 %v248_v48, %v212_v49 }
 0x2f4   :  { %v289_v52 = vpop.eup %288 }
 0x2f5   :  { %v230_v53 = vadd.f32 %v249_v50, %v221_v51  ;;  %v213_v54 = vmul.f32 %v289_v52, %v197_v37 }
 0x2f7   :  { %232 = vst.msk [vmem:[%s388_s7] sm:$0xff] %vm53_vm1, %v230_v53  ;;  %v222_v55 = vmul.f32 %v248_v48, %v213_v54 }
 0x2f9   :  { %v231_v56 = vadd.f32 %v249_v50, %v222_v55 }
 0x2fb   :  { %233 = vst.msk [vmem:[%s388_s7 + $0x8] sm:$0xff] %vm53_vm1, %v231_v56 }

// kernel: transformer_forward.7
= control target key start
LH: loop header
LB: loop body
LE: loop exit
PB: predicated region body
PF: predicated region fallthrough
CT: control target
= control target key end

     0   :  { %s1521_s21 = smov 0   ;;  %s1674_s0 = inlined_call_operand.vmem [shape: f32[2,8,32], index: 0, kind: input, shape index: {}, may-alias: {0,1}]   ;;  %s1675_s1 = inlined_call_operand.vmem [shape: f32[2,8,32], index: 1, kind: input, shape index: {}, may-alias: {0,1}]   ;;  %s1676_s2 = inlined_call_operand.vmem [shape: bf16[32,32], index: 2, kind: input, shape index: {}]   ;;  %s1677_s3 = inlined_call_operand.vmem [shape: f32[1,32], index: 3, kind: input, shape index: {}]   ;;  %s1678_s4 = inlined_call_operand.vmem [shape: bf16[32,32], index: 4, kind: input, shape index: {}]   ;;  %s1679_s5 = inlined_call_operand.vmem [shape: f32[1,32], index: 5, kind: input, shape index: {}]   ;;  %s1680_s6 = inlined_call_operand.vmem [shape: bf16[32,32], index: 6, kind: input, shape index: {}]   ;;  %s1681_s7 = inlined_call_operand.vmem [shape: f32[1,32], index: 7, kind: input, shape index: {}]   ;;  %s1682_s8 = inlined_call_operand.vmem [shape: bf16[32,32], index: 8, kind: input, shape index: {}]   ;;  %s1683_s9 = inlined_call_operand.vmem [shape: f32[1,32], index: 9, kind: input, shape index: {}]   ;;  %s1684_s10 = inlined_call_operand.vmem [shape: f32[1,32], index: 10, kind: input, shape index: {}]   ;;  %s1685_s11 = inlined_call_operand.vmem [shape: f32[1,32], index: 11, kind: input, shape index: {}]   ;;  %s1686_s12 = inlined_call_operand.vmem [shape: f32[2,8,32], index: 12, kind: output, shape index: {}]  }
   0x1 LB: > { %s1254_s22 = sadd.s32 4294967295, %s1446_s21   ;;  %p1258_p0 = scmp.ge.s32.totalorder %s1446_s21, 1  ;;  %s1446_s21 = sphi %s1521_s21, %s22_s21  }
   0x2   : > { %p370_p1 = scmp.lt.s32.totalorder %s1446_s21, 3 }
   0x4   : > { %p371_p2 = pnand %p1258_p0, %p370_p1 }
   0x5   : > { %v1414_v0 = vld [vmem:[%s1678_s4] sm:$0xff] (!%p371_p2)   ;;  %v1448_v1 = vmov (!%p371_p2), 0.0   ;;  %v1416_v3 = vld [vmem:[%s1678_s4 + $0x8] sm:$0xff] (!%p371_p2)   ;;  %vm1449_vm0 = vmmov (!%p371_p2), 0   ;;  %p414_p3 = scmp.lt.s32.totalorder (!%p371_p2), %s1254_s22, 1  ;;  %vm454_vm1 = vcmask (!%p371_p2), 261120  }
   0x6   : > { %374 = sbr.rel (%p371_p2) target bundleno = 1765 (0x6e5), region = 68  ;;  %1326 = vmatprep.subr.bf16.mxu1 (!%p371_p2), %v1448_v1  ;;  %1318 = vmatprep.subr.bf16.mxu0 (!%p371_p2), %v1448_v1  ;;  %v1415_v2 = vld [vmem:[%s1676_s2] sm:$0xff] (!%p371_p2)   ;;  %v1417_v4 = vld [vmem:[%s1676_s2 + $0x8] sm:$0xff] (!%p371_p2)   ;;  %vm629_vm2 = vcmask (!%p371_p2), 64512   ;;  %s1450_s25 = smov (!%p371_p2), 112   ;;  %vm693_vm3 = vcmask (!%p371_p2), 1043456  }
   0x7   : > { %1327 = vmatpush3.bf16.msra.mxu1 (!%p371_p2), %v1414_v0  ;;  %1330 = vmatprep.mubr.msk.bf16.mxu1 (!%p371_p2), %vm1449_vm0, %v1448_v1  ;;  %v1266_v9 = vld [vmem:[%s1679_s5] ss:$0 sm:$0xff] (!%p371_p2)  ;;  %s1451_s26 = smov (!%p371_p2), 120   ;;  %s1452_s27 = smov (!%p371_p2), 104   ;;  %v1419_v25 = vld [vmem:[%s1680_s6 + $0x8] sm:$0xff] (!%p371_p2)   ;;  %vm1086_vm4 = vcmask (!%p371_p2), 130048  }
   0x8   : > { %1328 = vmatprep.subr.bf16.mxu1 (!%p371_p2), %v1448_v1  ;;  %1319 = vmatpush3.bf16.msra.mxu0 (!%p371_p2), %v1415_v2  ;;  %v1262_v10 = vld [vmem:[%s1677_s3] ss:$0 sm:$0xff] (!%p371_p2)  ;;  %s1454_s23 = smov (!%p371_p2), 16   ;;  %s1455_s24 = smov (!%p371_p2), 24   ;;  %vm1088_vm5 = vcmask (!%p371_p2), 195584  }
   0x9   : > { %1320 = vmatprep.subr.bf16.mxu0 (!%p371_p2), %v1448_v1  ;;  %1322 = vmatprep.mubr.msk.bf16.mxu0 (!%p371_p2), %vm1449_vm0, %v1448_v1  ;;  %v1418_v24 = vld [vmem:[%s1680_s6] sm:$0xff] (!%p371_p2)  }
   0xa   : > { %v1270_v41 = vld [vmem:[%s1681_s7] ss:$0 sm:$0xff] (!%p371_p2) }
   0xb   : > { %1329 = vmatpush3.bf16.msra.mxu1 (!%p371_p2), %v1416_v3 }
   0xc   : > { %1321 = vmatpush3.bf16.msra.mxu0 (!%p371_p2), %v1417_v4  ;;  %1342 = vmatprep.subr.bf16.mxu1 (!%p371_p2), %v1448_v1 }
   0xd   : > { %s1688_s22 = smov (!%p414_p3, %s1254_s22), 1  ;;  %1334 = vmatprep.subr.bf16.mxu0 %v1448_v1 }
   0xe   : > { %s1549_s13 = sshll.u32 %s1688_s22, 3 }
   0xf   : > { %s421_s16 = scalar_lea.vmem %s1675_s1, %s1549_s13  ;;  %s417_s19 = scalar_lea.vmem %s1674_s0, %s1549_s13 }
  0x10   : > { %v428_v5 = vld [vmem:[%s421_s16] sm:$0xff]  ;;  %s425_s16 = scalar_lea.vmem %s1686_s12, %s1549_s13 }
  0x11   : > { %v430_v6 = vpack.c.bf16 %v428_v5, %v428_v5  ;;  %v1561_v7 = vld [vmem:[%s417_s19] sm:$0xff]  ;;  %s1453_s19 = smov 8  }
  0x12   : > { %v429_v8 = vpack.c.bf16 %v1561_v7, %v1561_v7 }
  0x13   : > { %1331 = vmatmul.mubr.msk.bf16.vlgmr.msra.gmra.mrb[0].mxu1 %vm454_vm1, %v430_v6 }
  0x14   : > { %1323 = vmatmul.mubr.msk.bf16.vlgmr.msra.gmra.mrb[0].mxu0 %vm454_vm1, %v429_v8  ;;  %1344 = vmatprep.mubr.msk.bf16.mxu1 %vm1449_vm0, %v1448_v1 }
  0x15   : > { %1338 = vmatprep.mubr.msk.bf16.mxu0 %vm1449_vm0, %v1448_v1  ;;  %1335 = vmatpush3.bf16.msra.mxu0 %v1418_v24 }
  0x16   : > { %1336 = vmatprep.subr.bf16.mxu0 %v1448_v1 }
  0x19   : > { %1337 = vmatpush3.bf16.msra.mxu0 %v1419_v25 }
  0x1a   : > { %1348 = vmatprep.subr.bf16.mxu0 %v1448_v1 }
  0x1c   : > { %1339 = vmatmul.mubr.msk.bf16.vlgmr.msra.gmra.mrb[4].mxu0 %vm454_vm1, %v430_v6 }
  0x1d   : > { %1350 = vmatprep.mubr.msk.bf16.mxu0 %vm1449_vm0, %v1448_v1 }
  0xe6   : > { %v558_v11 = vpop.f32.mrb[0].mxu1 }
  0xe7   : > { %v559_v12 = vadd.f32 %v1266_v9, %v558_v11  ;;  %v1332_v13 = vpop.f32.mrb[1].mxu1  ;;  %v492_v14 = vpop.f32.mrb[0].mxu0 }
  0xe8   : > { %v561_v15 = vpop.f32.mrb[2].mxu1  ;;  %v493_v16 = vadd.f32 %v1262_v10, %v492_v14  ;;  %v1324_v17 = vpop.f32.mrb[1].mxu0 }
  0xe9   : > { %v628_v18 = vpack.c.bf16 %v559_v12, %v559_v12  ;;  %v1333_v19 = vpop.f32.mrb[3].mxu1  ;;  %v495_v20 = vpop.f32.mrb[2].mxu0 }
  0xea   : > { %v1325_v21 = vpop.f32.mrb[3].mxu0  ;;  %v627_v22 = vpack.c.bf16 %v493_v16, %v493_v16 }
  0xeb   : > { %853 = vrot.lane.b32.xlu1 %v628_v18, %s1450_s25  ;;  %741 = vrot.lane.b32.xlu0 %v628_v18, %s1451_s26  ;;  %v634_v23 = vsel %vm629_vm2, %v628_v18, 0 }
  0xec   : > { %1343 = vmatpush3.bf16.xpose.msra.mxu1 %v634_v23 }
  0xed   : > { %1354 = vmatprep.subr.bf16.mxu1 %v1448_v1 }
  0xef   : > { %851 = vrot.lane.b32.xlu1 %v627_v22, %s1450_s25  ;;  %738 = vrot.lane.b32.xlu0 %v627_v22, %s1451_s26  ;;  %v621_v42 = vpop.f32.mrb[4].mxu0 }
  0xf0   : > { %v622_v43 = vadd.f32 %v1270_v41, %v621_v42  ;;  %v1340_v44 = vpop.f32.mrb[5].mxu0 }
  0xf1   : > { %v624_v45 = vpop.f32.mrb[6].mxu0 }
  0xf2   : > { %v689_v46 = vpack.c.bf16 %v622_v43, %v622_v43  ;;  %v1341_v47 = vpop.f32.mrb[7].mxu0 }
  0xf3   : > { %962 = vrot.lane.b32.xlu1 %v627_v22, %s1452_s27  ;;  %964 = vrot.lane.b32.xlu0 %v628_v18, %s1452_s27 }
  0xf4   : > { %1345 = vmatmul.mubr.msk.bf16.vlgmr.msra.gmra.mrb[4].mxu1 %vm629_vm2, %v627_v22  ;;  %v695_v48 = vsel %vm693_vm3, %v689_v46, 0 }
  0xf5   : > { %1356 = vmatprep.mubr.msk.bf16.mxu1 %vm1449_vm0, %v1448_v1  ;;  %1349 = vmatpush3.bf16.msra.mxu0 %v695_v48 }
  0xf6   : > { %1360 = vmatprep.subr.bf16.mxu0 %v1448_v1 }
 0x15d   : > { %v742_v26 = vpop.permute.xlu0 %741  ;;  %v854_v28 = vpop.permute.xlu1 %853 }
 0x15e   : > { %v747_v27 = vsel %vm629_vm2, %v742_v26, 0  ;;  %v859_v30 = vsel %vm629_vm2, %v854_v28, 0 }
 0x15f   : > { %1355 = vmatpush3.bf16.xpose.msra.mxu1 %v747_v27 }
 0x160   : > { %1366 = vmatprep.subr.bf16.mxu1 %v1448_v1 }
 0x161   : > { %v739_v29 = vpop.permute.xlu0 %738  ;;  %v852_v32 = vpop.permute.xlu1 %851 }
 0x165   : > { %v965_v31 = vpop.permute.xlu0 %964  ;;  %v963_v34 = vpop.permute.xlu1 %962 }
 0x166   : > { %1357 = vmatmul.mubr.msk.bf16.vlgmr.msra.gmra.mrb[8].mxu1 %vm629_vm2, %v739_v29  ;;  %v970_v33 = vsel %vm629_vm2, %v965_v31, 0 }
 0x167   : > { %1367 = vmatpush3.bf16.xpose.msra.mxu1 %v859_v30  ;;  %1368 = vmatprep.mubr.msk.bf16.mxu1 %vm1449_vm0, %v1448_v1 }
 0x168   : > { %1378 = vmatprep.subr.bf16.mxu1 %v1448_v1 }
 0x16e   : > { %1369 = vmatmul.mubr.msk.bf16.vlgmr.msra.gmra.mrb[12].mxu1 %vm629_vm2, %v852_v32 }
 0x16f   : > { %1379 = vmatpush3.bf16.xpose.msra.mxu1 %v970_v33  ;;  %1380 = vmatprep.mubr.msk.bf16.mxu1 %vm1449_vm0, %v1448_v1 }
 0x170   : > { %1390 = vmatprep.subr.bf16.mxu1 %v1448_v1 }
 0x176   : > { %1381 = vmatmul.mubr.msk.bf16.vlgmr.msra.gmra.mrb[16].mxu1 %vm629_vm2, %v963_v34 }
 0x177   : > { %1394 = vmatprep.mubr.msk.bf16.mxu1 %vm1449_vm0, %v1448_v1 }
 0x1c7   : > { %v670_v35 = vpop.f32.mrb[4].mxu1 }
 0x1c8   : > { %v676_v36 = vmul.f32 0.35355338, %v670_v35  ;;  %v1346_v37 = vpop.f32.mrb[5].mxu1 }
 0x1c9   : > { %v673_v38 = vpop.f32.mrb[6].mxu1 }
 0x1ca   : > { %v1347_v39 = vpop.f32.mrb[7].mxu1  ;;  %v677_v40 = vsel %vm629_vm2, %v676_v36, -inf }
 0x1cb   : > { %678 = vmax.xlane.f32.xlu0 %v677_v40 }
 0x239   : > { %v783_v49 = vpop.f32.mrb[8].mxu1 }
 0x23a   : > { %v789_v50 = vmul.f32 0.35355338, %v783_v49  ;;  %v1358_v51 = vpop.f32.mrb[9].mxu1 }
 0x23b   : > { %v786_v52 = vpop.f32.mrb[10].mxu1  ;;  %v1420_v51 = vld [vmem:[%s1682_s8] sm:$0xff]  }
 0x23c   : > { %v1359_v53 = vpop.f32.mrb[11].mxu1  ;;  %v790_v54 = vsel %vm629_vm2, %v789_v50, -inf  ;;  %1391 = vmatpush3.bf16.msra.mxu1 %v1420_v51 }
 0x23d   : > { %791 = vmax.xlane.f32.xlu1 %v790_v54  ;;  %1392 = vmatprep.subr.bf16.mxu1 %v1448_v1 }
 0x241   : > { %v895_v55 = vpop.f32.mrb[12].mxu1 }
 0x242   : > { %v901_v56 = vmul.f32 0.35355338, %v895_v55  ;;  %v1370_v57 = vpop.f32.mrb[13].mxu1 }
 0x243   : > { %v898_v58 = vpop.f32.mrb[14].mxu1 }
 0x244   : > { %v1371_v59 = vpop.f32.mrb[15].mxu1  ;;  %v902_v60 = vsel %vm629_vm2, %v901_v56, -inf }
 0x245   : > { %903 = vmax.xlane.f32.xlu0 %v902_v60 }
 0x249   : > { %v1006_v61 = vpop.f32.mrb[16].mxu1 }
 0x24a   : > { %v1012_v62 = vmul.f32 0.35355338, %v1006_v61  ;;  %v1382_v63 = vpop.f32.mrb[17].mxu1 }
 0x24b   : > { %v1009_v0 = vpop.f32.mrb[18].mxu1 }
 0x24c   : > { %v1383_v2 = vpop.f32.mrb[19].mxu1  ;;  %v1013_v3 = vsel %vm629_vm2, %v1012_v62, -inf }
 0x24d   : > { %1014 = vmax.xlane.f32.xlu0 %v1013_v3 }
 0x258   : > { %v679_v4 = vpop.xlane.xlu0 %678 }
 0x259   : > { %v680_v5 = vsub.f32 %v676_v36, %v679_v4 }
 0x25b   : > { %v681_v6 = vmul.f32 1.442695, %v680_v5 }
 0x25d   : > { %1422 = vpow2.f32 %v681_v6 }
 0x267   : > { %v1423_v8 = vpop.eup %1422 }
 0x268   : > { %v683_v9 = vsel %vm629_vm2, %v1423_v8, 0.0 }
 0x269   : > { %684 = vadd.xlane.f32.xlu1 %v683_v9  ;;  %v1282_v9 = vld [vmem:[%s1683_s9] ss:$0 sm:$0xff] }
 0x27a   : > { %803 = vrot.lane.b32.xlu1 %v689_v46, %s1451_s26 }
 0x2ca   : > { %v792_v10 = vpop.xlane.xlu1 %791 }
 0x2cb   : > { %v793_v11 = vsub.f32 %v789_v50, %v792_v10 }
 0x2cd   : > { %v794_v12 = vmul.f32 1.442695, %v793_v11 }
 0x2cf   : > { %1424 = vpow2.f32 %v794_v12 }
 0x2d2   : > { %v904_v13 = vpop.xlane.xlu0 %903 }
 0x2d3   : > { %v905_v14 = vsub.f32 %v901_v56, %v904_v13  ;;  %v1421_v56 = vld [vmem:[%s1682_s8 + $0x8] sm:$0xff]  }
 0x2d4   : > { %1393 = vmatpush3.bf16.msra.mxu1 %v1421_v56 }
 0x2d5   : > { %v906_v15 = vmul.f32 1.442695, %v905_v14 }
 0x2d7   : > { %1426 = vpow2.f32 %v906_v15 }
 0x2d9   : > { %v1425_v16 = vpop.eup %1424 }
 0x2da   : > { %v1015_v17 = vpop.xlane.xlu0 %1014  ;;  %v796_v18 = vsel %vm629_vm2, %v1425_v16, 0.0 }
 0x2db   : > { %v1016_v19 = vsub.f32 %v1012_v62, %v1015_v17  ;;  %797 = vadd.xlane.f32.xlu0 %v796_v18 }
 0x2dd   : > { %v1017_v20 = vmul.f32 1.442695, %v1016_v19 }
 0x2df   : > { %1428 = vpow2.f32 %v1017_v20 }
 0x2e1   : > { %v1427_v21 = vpop.eup %1426 }
 0x2e2   : > { %v908_v22 = vsel %vm629_vm2, %v1427_v21, 0.0 }
 0x2e3   : > { %909 = vadd.xlane.f32.xlu1 %v908_v22 }
 0x2e9   : > { %v1429_v23 = vpop.eup %1428 }
 0x2ea   : > { %v1019_v24 = vsel %vm629_vm2, %v1429_v23, 0.0 }
 0x2eb   : > { %1020 = vadd.xlane.f32.xlu0 %v1019_v24 }
 0x2f4   : > { %1025 = vrot.lane.b32.xlu1 %v689_v46, %s1452_s27 }
 0x2f6   : > { %v685_v25 = vpop.xlane.xlu1 %684 }
 0x2f7   : > { %1430 = vrcp.f32 %v685_v25 }
 0x2fa   : > { %v804_v27 = vpop.permute.xlu1 %803 }
 0x2fb   : > { %v809_v30 = vsel %vm693_vm3, %v804_v27, 0  ;;  %v1287_v27 = vld [vmem:[%s1685_s11] ss:$0 sm:$0xff] }
 0x301   : > { %v1431_v26 = vpop.eup %1430  ;;  %914 = vrot.lane.b32.xlu0 %v689_v46, %s1450_s25 }
 0x302   : > { %v687_v28 = vmul.f32 %v1431_v26, %v1423_v8 }
 0x304   : > { %v688_v29 = vpack.c.bf16 %v687_v28, %v687_v28 }
 0x306   : > { %1351 = vmatmul.mubr.msk.bf16.vlgmr.msra.gmra.mrb[8].mxu0 %vm629_vm2, %v688_v29 }
 0x307   : > { %1361 = vmatpush3.bf16.msra.mxu0 %v809_v30  ;;  %1362 = vmatprep.mubr.msk.bf16.mxu0 %vm1449_vm0, %v1448_v1 }
 0x308   : > { %1372 = vmatprep.subr.bf16.mxu0 %v1448_v1 }
 0x368   : > { %v798_v31 = vpop.xlane.xlu0 %797 }
 0x369   : > { %1432 = vrcp.f32 %v798_v31 }
 0x370   : > { %v910_v32 = vpop.xlane.xlu1 %909 }
 0x371   : > { %1434 = vrcp.f32 %v910_v32 }
 0x373   : > { %v1433_v33 = vpop.eup %1432 }
 0x374   : > { %v800_v34 = vmul.f32 %v1433_v33, %v1425_v16  ;;  %v1026_v41 = vpop.permute.xlu1 %1025 }
 0x375   : > { %v1031_v43 = vsel %vm693_vm3, %v1026_v41, 0 }
 0x376   : > { %v801_v35 = vpack.c.bf16 %v800_v34, %v800_v34 }
 0x378   : > { %v1021_v36 = vpop.xlane.xlu0 %1020  ;;  %1363 = vmatmul.mubr.msk.bf16.vlgmr.msra.gmra.mrb[12].mxu0 %vm629_vm2, %v801_v35 }
 0x379   : > { %1436 = vrcp.f32 %v1021_v36  ;;  %1374 = vmatprep.mubr.msk.bf16.mxu0 %vm1449_vm0, %v1448_v1 }
 0x37b   : > { %v1435_v37 = vpop.eup %1434 }
 0x37c   : > { %v912_v38 = vmul.f32 %v1435_v37, %v1427_v21  ;;  %v915_v39 = vpop.permute.xlu0 %914 }
 0x37d   : > { %v920_v40 = vsel %vm693_vm3, %v915_v39, 0 }
 0x37e   : > { %1373 = vmatpush3.bf16.msra.mxu0 %v920_v40  ;;  %v913_v42 = vpack.c.bf16 %v912_v38, %v912_v38 }
 0x37f   : > { %1384 = vmatprep.subr.bf16.mxu0 %v1448_v1 }
 0x381   : > { %1375 = vmatmul.mubr.msk.bf16.vlgmr.msra.gmra.mrb[16].mxu0 %vm629_vm2, %v913_v42 }
 0x382   : > { %1385 = vmatpush3.bf16.msra.mxu0 %v1031_v43  ;;  %1386 = vmatprep.mubr.msk.bf16.mxu0 %vm1449_vm0, %v1448_v1 }
 0x383   : > { %v1437_v44 = vpop.eup %1436 }
 0x384   : > { %v1023_v45 = vmul.f32 %v1437_v44, %v1429_v23 }
 0x386   : > { %v1024_v46 = vpack.c.bf16 %v1023_v45, %v1023_v45 }
 0x389   : > { %1387 = vmatmul.mubr.msk.bf16.vlgmr.msra.gmra.mrb[20].mxu0 %vm629_vm2, %v1024_v46 }
 0x3d9   : > { %v731_v47 = vpop.f32.mrb[8].mxu0 }
 0x3da   : > { %v1352_v48 = vpop.f32.mrb[9].mxu0 }
 0x3db   : > { %v734_v49 = vpop.f32.mrb[10].mxu0 }
 0x3dc   : > { %v1353_v50 = vpop.f32.mrb[11].mxu0 }
 0x44b   : > { %v845_v52 = vpop.f32.mrb[12].mxu0 }
 0x44c   : > { %1074 = vrot.lane.b32.xlu1 %v845_v52, %s1453_s19  ;;  %v1364_v53 = vpop.f32.mrb[13].mxu0 }
 0x44d   : > { %v848_v54 = vpop.f32.mrb[14].mxu0 }
 0x44e   : > { %v1365_v55 = vpop.f32.mrb[15].mxu0 }
 0x454   : > { %v956_v57 = vpop.f32.mrb[16].mxu0 }
 0x455   : > { %1078 = vrot.lane.b32.xlu0 %v956_v57, %s1454_s23  ;;  %v1376_v58 = vpop.f32.mrb[17].mxu0 }
 0x456   : > { %v959_v59 = vpop.f32.mrb[18].mxu0 }
 0x457   : > { %v1377_v60 = vpop.f32.mrb[19].mxu0 }
 0x45c   : > { %v1067_v61 = vpop.f32.mrb[20].mxu0 }
 0x45d   : > { %1082 = vrot.lane.b32.xlu1 %v1067_v61, %s1455_s24  ;;  %v1388_v1 = vpop.f32.mrb[21].mxu0 }
 0x45e   : > { %v1070_v62 = vpop.f32.mrb[22].mxu0 }
 0x45f   : > { %v1389_v63 = vpop.f32.mrb[23].mxu0 }
 0x4be   : > { %v1075_v0 = vpop.permute.xlu1 %1074 }
 0x4bf   : > { %v1085_v3 = vsel %vm629_vm2, %v731_v47, %v1075_v0 }
 0x4c7   : > { %v1079_v2 = vpop.permute.xlu0 %1078 }
 0x4c8   : > { %v1087_v4 = vsel %vm1086_vm4, %v1085_v3, %v1079_v2 }
 0x4cf   : > { %v1083_v5 = vpop.permute.xlu1 %1082 }
 0x4d0   : > { %v1089_v6 = vsel %vm1088_vm5, %v1087_v4, %v1083_v5 }
 0x4d1   : > { %v1090_v8 = vpack.c.bf16 %v1089_v6, %v1089_v6 }
 0x4d3   : > { %1395 = vmatmul.mubr.msk.bf16.vlgmr.msra.gmra.mrb[20].mxu1 %vm454_vm1, %v1090_v8 }
 0x5a6   : > { %v1151_v10 = vpop.f32.mrb[20].mxu1 }
 0x5a7   : > { %v1152_v11 = vadd.f32 %v1282_v9, %v1151_v10  ;;  %v1396_v12 = vpop.f32.mrb[21].mxu1 }
 0x5a8   : > { %v1154_v13 = vpop.f32.mrb[22].mxu1 }
 0x5a9   : > { %v1397_v14 = vpop.f32.mrb[23].mxu1  ;;  %v1157_v15 = vadd.f32 %v1152_v11, %v1561_v7  ;;  %v1286_v7 = vld [vmem:[%s1684_s10] ss:$0 sm:$0xff] }
 0x5ab   : > { %v1158_v16 = vsel %vm454_vm1, %v1157_v15, 0.0 }
 0x5ac   : > { %1159 = vadd.xlane.f32.xlu0 %v1158_v16 }
 0x639   : > { %v1160_v17 = vpop.xlane.xlu0 %1159 }
 0x63a   : > { %v1162_v18 = vmul.f32 0.03125, %v1160_v17 }
 0x63c   : > { %v1163_v19 = vsub.f32 %v1157_v15, %v1162_v18 }
 0x63e   : > { %v1164_v20 = vmul.f32 %v1163_v19, %v1163_v19 }
 0x640   : > { %v1165_v21 = vsel %vm454_vm1, %v1164_v20, 0.0 }
 0x641   : > { %1166 = vadd.xlane.f32.xlu1 %v1165_v21 }
 0x6ce   : > { %v1167_v22 = vpop.xlane.xlu1 %1166 }
 0x6cf   : > { %v1168_v23 = vmul.f32 0.03125, %v1167_v22 }
 0x6d1   : > { %v1169_v24 = vadd.f32 1e-05, %v1168_v23 }
 0x6d3   : > { %1438 = vrsqrt.f32 %v1169_v24 }
 0x6dd   : > { %v1439_v25 = vpop.eup %1438 }
 0x6de   : > { %v1171_v26 = vmul.f32 %v1439_v25, %v1163_v19 }
 0x6e0   : > { %v1179_v28 = vmul.f32 %v1286_v7, %v1171_v26 }
 0x6e2   : > { %v1187_v29 = vadd.f32 %v1287_v27, %v1179_v28 }
 0x6e4   : > { %1188 = vst.msk [vmem:[%s425_s16] sm:$0xff] %vm454_vm1, %v1187_v29 }
 0x6e5 PF: > { %s22_s21 = sadd.s32 1, %s1446_s21  }
 0x6e6   : > { %p19_p4 = scmp.ge.s32.totalorder %s22_s21, 4  }
 0x6e8   :  { %21 = sbr.rel (!%p19_p4) target bundleno = 1 (0x1), region = 101 }

// kernel: transformer_forward.8
= control target key start
LH: loop header
LB: loop body
LE: loop exit
PB: predicated region body
PF: predicated region fallthrough
CT: control target
= control target key end

     0   :  { %s1495_s21 = smov 0   ;;  %s1653_s0 = inlined_call_operand.vmem [shape: f32[2,8,32], index: 0, kind: input, shape index: {}]   ;;  %s1654_s1 = inlined_call_operand.vmem [shape: f32[1,10,32], index: 1, kind: input, shape index: {}]   ;;  %s1655_s2 = inlined_call_operand.vmem [shape: bf16[32,32], index: 2, kind: input, shape index: {}]   ;;  %s1656_s3 = inlined_call_operand.vmem [shape: f32[1,32], index: 3, kind: input, shape index: {}]   ;;  %s1657_s4 = inlined_call_operand.vmem [shape: bf16[32,32], index: 4, kind: input, shape index: {}]   ;;  %s1658_s5 = inlined_call_operand.vmem [shape: f32[1,32], index: 5, kind: input, shape index: {}]   ;;  %s1659_s6 = inlined_call_operand.vmem [shape: bf16[32,32], index: 6, kind: input, shape index: {}]   ;;  %s1660_s7 = inlined_call_operand.vmem [shape: f32[1,32], index: 7, kind: input, shape index: {}]   ;;  %s1661_s8 = inlined_call_operand.vmem [shape: bf16[32,32], index: 8, kind: input, shape index: {}]   ;;  %s1662_s9 = inlined_call_operand.vmem [shape: f32[1,32], index: 9, kind: input, shape index: {}]   ;;  %s1663_s10 = inlined_call_operand.vmem [shape: f32[1,32], index: 10, kind: input, shape index: {}]   ;;  %s1664_s11 = inlined_call_operand.vmem [shape: f32[1,32], index: 11, kind: input, shape index: {}]   ;;  %s1665_s12 = inlined_call_operand.vmem [shape: f32[2,8,32], index: 12, kind: output, shape index: {}]  }
   0x1 LB: > { %s1229_s22 = sadd.s32 4294967295, %s1420_s21   ;;  %p1233_p0 = scmp.ge.s32.totalorder %s1420_s21, 1  ;;  %s1420_s21 = sphi %s1495_s21, %s22_s21  }
   0x2   : > { %p361_p1 = scmp.lt.s32.totalorder %s1420_s21, 3 }
   0x4   : > { %p362_p2 = pnand %p1233_p0, %p361_p1 }
   0x5   : > { %v1388_v0 = vld [vmem:[%s1657_s4] sm:$0xff] (!%p362_p2)   ;;  %v1422_v1 = vmov (!%p362_p2), 0.0   ;;  %v1389_v2 = vld [vmem:[%s1657_s4 + $0x8] sm:$0xff] (!%p362_p2)   ;;  %vm1423_vm0 = vmmov (!%p362_p2), 0   ;;  %p401_p3 = scmp.lt.s32.totalorder (!%p362_p2), %s1229_s22, 1  ;;  %vm438_vm1 = vcmask (!%p362_p2), 261120  }
   0x6   : > { %365 = sbr.rel (%p362_p2) target bundleno = 1762 (0x6e2), region = 68  ;;  %1300 = vmatprep.subr.bf16.mxu1 (!%p362_p2), %v1422_v1  ;;  %1292 = vmatprep.subr.bf16.mxu0 (!%p362_p2), %v1422_v1  ;;  %v1390_v3 = vld [vmem:[%s1655_s2] sm:$0xff] (!%p362_p2)   ;;  %v412_v5 = vld [vmem:[%s1654_s1 + $0x8] sm:$0x3] (!%p362_p2)  ;;  %vm615_vm2 = vcmask (!%p362_p2), 64512   ;;  %s1424_s27 = smov (!%p362_p2), 112  }
   0x7   : > { %1301 = vmatpush3.bf16.msra.mxu1 (!%p362_p2), %v1388_v0  ;;  %1304 = vmatprep.mubr.msk.bf16.mxu1 (!%p362_p2), %vm1423_vm0, %v1422_v1  ;;  %v411_v4 = vld [vmem:[%s1654_s1] sm:$0xff] (!%p362_p2)  ;;  %v1391_v6 = vld [vmem:[%s1655_s2 + $0x8] sm:$0xff] (!%p362_p2)   ;;  %s1425_s28 = smov (!%p362_p2), 120   ;;  %s1426_s29 = smov (!%p362_p2), 104   ;;  %vm663_vm3 = vcmask (!%p362_p2), 80896   ;;  %vm680_vm4 = vcmask (!%p362_p2), 1044480  }
   0x8   : > { %1302 = vmatprep.subr.bf16.mxu1 (!%p362_p2), %v1422_v1  ;;  %1296 = vmatprep.mubr.msk.bf16.mxu0 (!%p362_p2), %vm1423_vm0, %v1422_v1  ;;  %v414_v7 = vpack.c.bf16 (!%p362_p2), %v412_v5, %v411_v4  ;;  %v1240_v10 = vld [vmem:[%s1658_s5] ss:$0 sm:$0xff] (!%p362_p2)  ;;  %v1393_v27 = vld [vmem:[%s1659_s6 + $0x8] sm:$0xff] (!%p362_p2)   ;;  %s1427_s23 = smov (!%p362_p2), 8   ;;  %s1428_s26 = smov (!%p362_p2), 16   ;;  %vm1073_vm5 = vcmask (!%p362_p2), 130048  }
   0x9   : > { %1293 = vmatpush3.bf16.msra.mxu0 (!%p362_p2), %v1390_v3  ;;  %v1236_v13 = vld [vmem:[%s1656_s3] ss:$0 sm:$0xff] (!%p362_p2)  ;;  %vm1075_vm6 = vcmask (!%p362_p2), 195584  }
   0xa   : > { %1294 = vmatprep.subr.bf16.mxu0 (!%p362_p2), %v1422_v1  ;;  %v1392_v26 = vld [vmem:[%s1659_s6] sm:$0xff] (!%p362_p2)  }
   0xb   : > { %1303 = vmatpush3.bf16.msra.mxu1 (!%p362_p2), %v1389_v2  ;;  %v1244_v43 = vld [vmem:[%s1660_s7] ss:$0 sm:$0xff] (!%p362_p2) }
   0xc   : > { %1316 = vmatprep.subr.bf16.mxu1 (!%p362_p2), %v1422_v1 }
   0xd   : > { %s1667_s22 = smov (!%p401_p3, %s1229_s22), 1  ;;  %1295 = vmatpush3.bf16.msra.mxu0 %v1391_v6 }
   0xe   : > { %s1234_s17 = sshll.u32 %s1667_s22, 3  ;;  %1305 = vmatmul.mubr.msk.bf16.vlgmr.msra.gmra.mrb[0].mxu1 %vm438_vm1, %v414_v7  ;;  %1308 = vmatprep.subr.bf16.mxu0 %v1422_v1 }
   0xf   : > { %s404_s20 = scalar_lea.vmem %s1653_s0, %s1234_s17  ;;  %1318 = vmatprep.mubr.msk.bf16.mxu1 %vm1423_vm0, %v1422_v1  ;;  %s408_s19 = scalar_lea.vmem %s1665_s12, %s1234_s17 }
  0x10   : > { %v1539_v8 = vld [vmem:[%s404_s20] sm:$0xff] }
  0x11   : > { %v413_v9 = vpack.c.bf16 %v1539_v8, %v1539_v8 }
  0x13   : > { %1297 = vmatmul.mubr.msk.bf16.vlgmr.msra.gmra.mrb[0].mxu0 %vm438_vm1, %v413_v9 }
  0x14   : > { %1312 = vmatprep.mubr.msk.bf16.mxu0 %vm1423_vm0, %v1422_v1  ;;  %1309 = vmatpush3.bf16.msra.mxu0 %v1392_v26 }
  0x15   : > { %1310 = vmatprep.subr.bf16.mxu0 %v1422_v1 }
  0x18   : > { %1311 = vmatpush3.bf16.msra.mxu0 %v1393_v27 }
  0x19   : > { %1322 = vmatprep.subr.bf16.mxu0 %v1422_v1 }
  0x1b   : > { %1313 = vmatmul.mubr.msk.bf16.vlgmr.msra.gmra.mrb[4].mxu0 %vm438_vm1, %v414_v7 }
  0x1c   : > { %1324 = vmatprep.mubr.msk.bf16.mxu0 %vm1423_vm0, %v1422_v1 }
  0xe1   : > { %v542_v11 = vpop.f32.mrb[0].mxu1 }
  0xe2   : > { %v1306_v12 = vpop.f32.mrb[1].mxu1  ;;  %v543_v15 = vadd.f32 %v1240_v10, %v542_v11 }
  0xe3   : > { %v545_v14 = vpop.f32.mrb[2].mxu1 }
  0xe4   : > { %v546_v16 = vadd.f32 %v1240_v10, %v545_v14  ;;  %v1307_v17 = vpop.f32.mrb[3].mxu1 }
  0xe6   : > { %v476_v18 = vpop.f32.mrb[0].mxu0  ;;  %v614_v21 = vpack.c.bf16 %v546_v16, %v543_v15 }
  0xe7   : > { %v477_v19 = vadd.f32 %v1236_v13, %v476_v18  ;;  %v1298_v20 = vpop.f32.mrb[1].mxu0 }
  0xe8   : > { %v479_v22 = vpop.f32.mrb[2].mxu0  ;;  %840 = vrot.lane.b32.xlu1 %v614_v21, %s1424_s27  ;;  %728 = vrot.lane.b32.xlu0 %v614_v21, %s1425_s28  ;;  %v620_v25 = vsel %vm615_vm2, %v614_v21, 0 }
  0xe9   : > { %v1299_v23 = vpop.f32.mrb[3].mxu0  ;;  %v613_v24 = vpack.c.bf16 %v477_v19, %v477_v19  ;;  %1317 = vmatpush3.bf16.xpose.msra.mxu1 %v620_v25 }
  0xea   : > { %1328 = vmatprep.subr.bf16.mxu1 %v1422_v1 }
  0xec   : > { %838 = vrot.lane.b32.xlu1 %v613_v24, %s1424_s27  ;;  %725 = vrot.lane.b32.xlu0 %v613_v24, %s1425_s28 }
  0xee   : > { %v606_v44 = vpop.f32.mrb[4].mxu0 }
  0xef   : > { %v607_v45 = vadd.f32 %v1244_v43, %v606_v44  ;;  %v1314_v46 = vpop.f32.mrb[5].mxu0 }
  0xf0   : > { %949 = vrot.lane.b32.xlu1 %v613_v24, %s1426_s29  ;;  %951 = vrot.lane.b32.xlu0 %v614_v21, %s1426_s29  ;;  %v609_v47 = vpop.f32.mrb[6].mxu0 }
  0xf1   : > { %1319 = vmatmul.mubr.msk.bf16.vlgmr.msra.gmra.mrb[4].mxu1 %vm615_vm2, %v613_v24  ;;  %v610_v48 = vadd.f32 %v1244_v43, %v609_v47  ;;  %v1315_v49 = vpop.f32.mrb[7].mxu0 }
  0xf2   : > { %1330 = vmatprep.mubr.msk.bf16.mxu1 %vm1423_vm0, %v1422_v1 }
  0xf3   : > { %v676_v50 = vpack.c.bf16 %v610_v48, %v607_v45 }
  0xf5   : > { %v682_v51 = vsel %vm680_vm4, %v676_v50, 0 }
  0xf6   : > { %1323 = vmatpush3.bf16.msra.mxu0 %v682_v51 }
  0xf7   : > { %1334 = vmatprep.subr.bf16.mxu0 %v1422_v1 }
 0x15a   : > { %v729_v28 = vpop.permute.xlu0 %728  ;;  %v841_v30 = vpop.permute.xlu1 %840 }
 0x15b   : > { %v734_v29 = vsel %vm615_vm2, %v729_v28, 0  ;;  %v846_v32 = vsel %vm615_vm2, %v841_v30, 0 }
 0x15c   : > { %1329 = vmatpush3.bf16.xpose.msra.mxu1 %v734_v29 }
 0x15d   : > { %1340 = vmatprep.subr.bf16.mxu1 %v1422_v1 }
 0x15e   : > { %v726_v31 = vpop.permute.xlu0 %725  ;;  %v839_v34 = vpop.permute.xlu1 %838 }
 0x162   : > { %v952_v33 = vpop.permute.xlu0 %951  ;;  %v950_v36 = vpop.permute.xlu1 %949 }
 0x163   : > { %1331 = vmatmul.mubr.msk.bf16.vlgmr.msra.gmra.mrb[8].mxu1 %vm615_vm2, %v726_v31  ;;  %v957_v35 = vsel %vm615_vm2, %v952_v33, 0 }
 0x164   : > { %1341 = vmatpush3.bf16.xpose.msra.mxu1 %v846_v32  ;;  %1342 = vmatprep.mubr.msk.bf16.mxu1 %vm1423_vm0, %v1422_v1 }
 0x165   : > { %1352 = vmatprep.subr.bf16.mxu1 %v1422_v1 }
 0x16b   : > { %1343 = vmatmul.mubr.msk.bf16.vlgmr.msra.gmra.mrb[12].mxu1 %vm615_vm2, %v839_v34 }
 0x16c   : > { %1353 = vmatpush3.bf16.xpose.msra.mxu1 %v957_v35  ;;  %1354 = vmatprep.mubr.msk.bf16.mxu1 %vm1423_vm0, %v1422_v1 }
 0x16d   : > { %1364 = vmatprep.subr.bf16.mxu1 %v1422_v1 }
 0x173   : > { %1355 = vmatmul.mubr.msk.bf16.vlgmr.msra.gmra.mrb[16].mxu1 %vm615_vm2, %v950_v36 }
 0x174   : > { %1368 = vmatprep.mubr.msk.bf16.mxu1 %vm1423_vm0, %v1422_v1 }
 0x1c4   : > { %v656_v37 = vpop.f32.mrb[4].mxu1 }
 0x1c5   : > { %v662_v38 = vmul.f32 0.35355338, %v656_v37  ;;  %v1320_v39 = vpop.f32.mrb[5].mxu1 }
 0x1c6   : > { %v659_v40 = vpop.f32.mrb[6].mxu1 }
 0x1c7   : > { %v1321_v41 = vpop.f32.mrb[7].mxu1  ;;  %v664_v42 = vsel %vm663_vm3, %v662_v38, -inf }
 0x1c8   : > { %665 = vmax.xlane.f32.xlu0 %v664_v42 }
 0x236   : > { %v770_v52 = vpop.f32.mrb[8].mxu1 }
 0x237   : > { %v776_v53 = vmul.f32 0.35355338, %v770_v52  ;;  %v1332_v54 = vpop.f32.mrb[9].mxu1 }
 0x238   : > { %v773_v55 = vpop.f32.mrb[10].mxu1  ;;  %v1394_v54 = vld [vmem:[%s1661_s8] sm:$0xff]  }
 0x239   : > { %v1333_v56 = vpop.f32.mrb[11].mxu1  ;;  %v777_v57 = vsel %vm663_vm3, %v776_v53, -inf  ;;  %1365 = vmatpush3.bf16.msra.mxu1 %v1394_v54 }
 0x23a   : > { %778 = vmax.xlane.f32.xlu1 %v777_v57  ;;  %1366 = vmatprep.subr.bf16.mxu1 %v1422_v1 }
 0x23e   : > { %v882_v58 = vpop.f32.mrb[12].mxu1 }
 0x23f   : > { %v888_v59 = vmul.f32 0.35355338, %v882_v58  ;;  %v1344_v60 = vpop.f32.mrb[13].mxu1 }
 0x240   : > { %v885_v61 = vpop.f32.mrb[14].mxu1 }
 0x241   : > { %v1345_v62 = vpop.f32.mrb[15].mxu1  ;;  %v889_v63 = vsel %vm663_vm3, %v888_v59, -inf }
 0x242   : > { %890 = vmax.xlane.f32.xlu0 %v889_v63 }
 0x246   : > { %v993_v0 = vpop.f32.mrb[16].mxu1 }
 0x247   : > { %v999_v2 = vmul.f32 0.35355338, %v993_v0  ;;  %v1356_v3 = vpop.f32.mrb[17].mxu1 }
 0x248   : > { %v996_v4 = vpop.f32.mrb[18].mxu1 }
 0x249   : > { %v1357_v5 = vpop.f32.mrb[19].mxu1  ;;  %v1000_v6 = vsel %vm663_vm3, %v999_v2, -inf }
 0x24a   : > { %1001 = vmax.xlane.f32.xlu0 %v1000_v6 }
 0x255   : > { %v666_v7 = vpop.xlane.xlu0 %665 }
 0x256   : > { %v667_v9 = vsub.f32 %v662_v38, %v666_v7 }
 0x258   : > { %v668_v10 = vmul.f32 1.442695, %v667_v9 }
 0x25a   : > { %1396 = vpow2.f32 %v668_v10 }
 0x264   : > { %v1397_v11 = vpop.eup %1396 }
 0x265   : > { %v670_v12 = vsel %vm663_vm3, %v1397_v11, 0.0 }
 0x266   : > { %671 = vadd.xlane.f32.xlu1 %v670_v12  ;;  %v1256_v12 = vld [vmem:[%s1662_s9] ss:$0 sm:$0xff] }
 0x277   : > { %790 = vrot.lane.b32.xlu1 %v676_v50, %s1425_s28 }
 0x2c7   : > { %v779_v13 = vpop.xlane.xlu1 %778 }
 0x2c8   : > { %v780_v14 = vsub.f32 %v776_v53, %v779_v13 }
 0x2ca   : > { %v781_v15 = vmul.f32 1.442695, %v780_v14 }
 0x2cc   : > { %1398 = vpow2.f32 %v781_v15 }
 0x2cf   : > { %v891_v16 = vpop.xlane.xlu0 %890 }
 0x2d0   : > { %v892_v17 = vsub.f32 %v888_v59, %v891_v16  ;;  %v1395_v59 = vld [vmem:[%s1661_s8 + $0x8] sm:$0xff]  }
 0x2d1   : > { %1367 = vmatpush3.bf16.msra.mxu1 %v1395_v59 }
 0x2d2   : > { %v893_v18 = vmul.f32 1.442695, %v892_v17 }
 0x2d4   : > { %1400 = vpow2.f32 %v893_v18 }
 0x2d6   : > { %v1399_v19 = vpop.eup %1398 }
 0x2d7   : > { %v1002_v20 = vpop.xlane.xlu0 %1001  ;;  %v783_v21 = vsel %vm663_vm3, %v1399_v19, 0.0 }
 0x2d8   : > { %v1003_v22 = vsub.f32 %v999_v2, %v1002_v20  ;;  %784 = vadd.xlane.f32.xlu0 %v783_v21 }
 0x2da   : > { %v1004_v23 = vmul.f32 1.442695, %v1003_v22 }
 0x2dc   : > { %1402 = vpow2.f32 %v1004_v23 }
 0x2de   : > { %v1401_v24 = vpop.eup %1400 }
 0x2df   : > { %v895_v25 = vsel %vm663_vm3, %v1401_v24, 0.0 }
 0x2e0   : > { %896 = vadd.xlane.f32.xlu1 %v895_v25 }
 0x2e6   : > { %v1403_v26 = vpop.eup %1402 }
 0x2e7   : > { %v1006_v27 = vsel %vm663_vm3, %v1403_v26, 0.0 }
 0x2e8   : > { %1007 = vadd.xlane.f32.xlu0 %v1006_v27 }
 0x2f1   : > { %1012 = vrot.lane.b32.xlu1 %v676_v50, %s1426_s29 }
 0x2f3   : > { %v672_v28 = vpop.xlane.xlu1 %671 }
 0x2f4   : > { %1404 = vrcp.f32 %v672_v28 }
 0x2f7   : > { %v791_v30 = vpop.permute.xlu1 %790 }
 0x2f8   : > { %v796_v33 = vsel %vm680_vm4, %v791_v30, 0  ;;  %v1261_v30 = vld [vmem:[%s1664_s11] ss:$0 sm:$0xff] }
 0x2fe   : > { %v1405_v29 = vpop.eup %1404  ;;  %901 = vrot.lane.b32.xlu0 %v676_v50, %s1424_s27  ;;  %s1429_s27 = smov 24  }
 0x2ff   : > { %v674_v31 = vmul.f32 %v1405_v29, %v1397_v11 }
 0x301   : > { %v675_v32 = vpack.c.bf16 %v674_v31, %v674_v31 }
 0x303   : > { %1325 = vmatmul.mubr.msk.bf16.vlgmr.msra.gmra.mrb[8].mxu0 %vm663_vm3, %v675_v32 }
 0x304   : > { %1335 = vmatpush3.bf16.msra.mxu0 %v796_v33  ;;  %1336 = vmatprep.mubr.msk.bf16.mxu0 %vm1423_vm0, %v1422_v1 }
 0x305   : > { %1346 = vmatprep.subr.bf16.mxu0 %v1422_v1 }
 0x365   : > { %v785_v34 = vpop.xlane.xlu0 %784 }
 0x366   : > { %1406 = vrcp.f32 %v785_v34 }
 0x36d   : > { %v897_v35 = vpop.xlane.xlu1 %896 }
 0x36e   : > { %1408 = vrcp.f32 %v897_v35 }
 0x370   : > { %v1407_v36 = vpop.eup %1406 }
 0x371   : > { %v787_v37 = vmul.f32 %v1407_v36, %v1399_v19  ;;  %v1013_v44 = vpop.permute.xlu1 %1012 }
 0x372   : > { %v1018_v46 = vsel %vm680_vm4, %v1013_v44, 0 }
 0x373   : > { %v788_v38 = vpack.c.bf16 %v787_v37, %v787_v37 }
 0x375   : > { %v1008_v39 = vpop.xlane.xlu0 %1007  ;;  %1337 = vmatmul.mubr.msk.bf16.vlgmr.msra.gmra.mrb[12].mxu0 %vm663_vm3, %v788_v38 }
 0x376   : > { %1410 = vrcp.f32 %v1008_v39  ;;  %1348 = vmatprep.mubr.msk.bf16.mxu0 %vm1423_vm0, %v1422_v1 }
 0x378   : > { %v1409_v40 = vpop.eup %1408 }
 0x379   : > { %v899_v41 = vmul.f32 %v1409_v40, %v1401_v24  ;;  %v902_v42 = vpop.permute.xlu0 %901 }
 0x37a   : > { %v907_v43 = vsel %vm680_vm4, %v902_v42, 0 }
 0x37b   : > { %1347 = vmatpush3.bf16.msra.mxu0 %v907_v43  ;;  %v900_v45 = vpack.c.bf16 %v899_v41, %v899_v41 }
 0x37c   : > { %1358 = vmatprep.subr.bf16.mxu0 %v1422_v1 }
 0x37e   : > { %1349 = vmatmul.mubr.msk.bf16.vlgmr.msra.gmra.mrb[16].mxu0 %vm663_vm3, %v900_v45 }
 0x37f   : > { %1359 = vmatpush3.bf16.msra.mxu0 %v1018_v46  ;;  %1360 = vmatprep.mubr.msk.bf16.mxu0 %vm1423_vm0, %v1422_v1 }
 0x380   : > { %v1411_v47 = vpop.eup %1410 }
 0x381   : > { %v1010_v48 = vmul.f32 %v1411_v47, %v1403_v26 }
 0x383   : > { %v1011_v49 = vpack.c.bf16 %v1010_v48, %v1010_v48 }
 0x386   : > { %1361 = vmatmul.mubr.msk.bf16.vlgmr.msra.gmra.mrb[20].mxu0 %vm663_vm3, %v1011_v49 }
 0x3d6   : > { %v718_v50 = vpop.f32.mrb[8].mxu0 }
 0x3d7   : > { %v1326_v51 = vpop.f32.mrb[9].mxu0 }
 0x3d8   : > { %v721_v52 = vpop.f32.mrb[10].mxu0 }
 0x3d9   : > { %v1327_v53 = vpop.f32.mrb[11].mxu0 }
 0x448   : > { %v832_v55 = vpop.f32.mrb[12].mxu0 }
 0x449   : > { %1061 = vrot.lane.b32.xlu1 %v832_v55, %s1427_s23  ;;  %v1338_v56 = vpop.f32.mrb[13].mxu0 }
 0x44a   : > { %v835_v57 = vpop.f32.mrb[14].mxu0 }
 0x44b   : > { %v1339_v58 = vpop.f32.mrb[15].mxu0 }
 0x451   : > { %v943_v60 = vpop.f32.mrb[16].mxu0 }
 0x452   : > { %1065 = vrot.lane.b32.xlu0 %v943_v60, %s1428_s26  ;;  %v1350_v61 = vpop.f32.mrb[17].mxu0 }
 0x453   : > { %v946_v62 = vpop.f32.mrb[18].mxu0 }
 0x454   : > { %v1351_v63 = vpop.f32.mrb[19].mxu0 }
 0x459   : > { %v1054_v0 = vpop.f32.mrb[20].mxu0 }
 0x45a   : > { %1069 = vrot.lane.b32.xlu1 %v1054_v0, %s1429_s27  ;;  %v1362_v1 = vpop.f32.mrb[21].mxu0 }
 0x45b   : > { %v1057_v2 = vpop.f32.mrb[22].mxu0 }
 0x45c   : > { %v1363_v3 = vpop.f32.mrb[23].mxu0 }
 0x4bb   : > { %v1062_v4 = vpop.permute.xlu1 %1061 }
 0x4bc   : > { %v1072_v6 = vsel %vm615_vm2, %v718_v50, %v1062_v4 }
 0x4c4   : > { %v1066_v5 = vpop.permute.xlu0 %1065 }
 0x4c5   : > { %v1074_v7 = vsel %vm1073_vm5, %v1072_v6, %v1066_v5 }
 0x4cc   : > { %v1070_v9 = vpop.permute.xlu1 %1069 }
 0x4cd   : > { %v1076_v10 = vsel %vm1075_vm6, %v1074_v7, %v1070_v9 }
 0x4ce   : > { %v1077_v11 = vpack.c.bf16 %v1076_v10, %v1076_v10 }
 0x4d0   : > { %1369 = vmatmul.mubr.msk.bf16.vlgmr.msra.gmra.mrb[20].mxu1 %vm438_vm1, %v1077_v11 }
 0x5a3   : > { %v1138_v13 = vpop.f32.mrb[20].mxu1 }
 0x5a4   : > { %v1139_v14 = vadd.f32 %v1256_v12, %v1138_v13  ;;  %v1370_v15 = vpop.f32.mrb[21].mxu1 }
 0x5a5   : > { %v1141_v16 = vpop.f32.mrb[22].mxu1 }
 0x5a6   : > { %v1371_v17 = vpop.f32.mrb[23].mxu1  ;;  %v1144_v18 = vadd.f32 %v1139_v14, %v1539_v8  ;;  %v1260_v8 = vld [vmem:[%s1663_s10] ss:$0 sm:$0xff] }
 0x5a8   : > { %v1145_v19 = vsel %vm438_vm1, %v1144_v18, 0.0 }
 0x5a9   : > { %1146 = vadd.xlane.f32.xlu0 %v1145_v19 }
 0x636   : > { %v1147_v20 = vpop.xlane.xlu0 %1146 }
 0x637   : > { %v1149_v21 = vmul.f32 0.03125, %v1147_v20 }
 0x639   : > { %v1150_v22 = vsub.f32 %v1144_v18, %v1149_v21 }
 0x63b   : > { %v1151_v23 = vmul.f32 %v1150_v22, %v1150_v22 }
 0x63d   : > { %v1152_v24 = vsel %vm438_vm1, %v1151_v23, 0.0 }
 0x63e   : > { %1153 = vadd.xlane.f32.xlu1 %v1152_v24 }
 0x6cb   : > { %v1154_v25 = vpop.xlane.xlu1 %1153 }
 0x6cc   : > { %v1155_v26 = vmul.f32 0.03125, %v1154_v25 }
 0x6ce   : > { %v1156_v27 = vadd.f32 1e-05, %v1155_v26 }
 0x6d0   : > { %1412 = vrsqrt.f32 %v1156_v27 }
 0x6da   : > { %v1413_v28 = vpop.eup %1412 }
 0x6db   : > { %v1158_v29 = vmul.f32 %v1413_v28, %v1150_v22 }
 0x6dd   : > { %v1166_v31 = vmul.f32 %v1260_v8, %v1158_v29 }
 0x6df   : > { %v1174_v32 = vadd.f32 %v1261_v30, %v1166_v31 }
 0x6e1   : > { %1175 = vst.msk [vmem:[%s408_s19] sm:$0xff] %vm438_vm1, %v1174_v32 }
 0x6e2 PF: > { %s22_s21 = sadd.s32 1, %s1420_s21  }
 0x6e3   : > { %p19_p4 = scmp.ge.s32.totalorder %s22_s21, 4  }
 0x6e5   :  { %21 = sbr.rel (!%p19_p4) target bundleno = 1 (0x1), region = 98 }

</bundles_post_ra>
